<compile_context>
chip_gen: v7x
topology: tpu7x:2x2x1
jax: 0.10.0
libtpu: 0.0.40
codegen_flags: <defaults>
</compile_context>

<pallas_src>
import jax
import jax.numpy as jnp
from jax import lax
from jax.experimental import pallas as pl
from jax.experimental.pallas import tpu as pltpu


def bottleneck_kernel(x_ref, w1_ref, b1_ref, w2_ref, b2_ref, w3_ref, b3_ref,
                      o_ref, s_ref):
    # x_ref: (1, H, W, Cin) f32; o_ref: (1, H, W, 4P) f32
    # w*_ref: bf16 (BN scale folded); b*_ref: f32
    # s_ref: (H+2, W, 3P) f32 scratch holding the three W-shifted copies of h1,
    #        zero-padded by one row at top/bottom (halo for the 3x3 conv).
    H, W, Cin = x_ref.shape[1], x_ref.shape[2], x_ref.shape[3]
    P = w1_ref.shape[1]

    xf = x_ref[0].reshape(H * W, Cin)                       # f32, kept for residual

    # ---- conv1 (1x1) + bn1 + relu ------------------------------------------
    h1 = jnp.dot(xf.astype(jnp.bfloat16), w1_ref[...],
                 preferred_element_type=jnp.float32)
    h1 = jnp.maximum(h1 + b1_ref[...], 0.0)                 # (HW, P) f32
    h1_3d = h1.reshape(H, W, P)

    # ---- conv2 (3x3, stride 1, pad 1) + bn2 + relu ---------------------------
    # Pack the three horizontal shifts of h1 along the channel axis of s_ref:
    #   s[1+i, j, kw*P:(kw+1)*P] = h1_padded[i+1, j+kw, :]
    # The thin halo (top/bottom rows and the two shifted edge columns) is
    # re-zeroed every step so the kernel stays correct under any grid order /
    # megacore sharding of the batch axis.
    s_ref[0:1, :, :] = jnp.zeros((1, W, 3 * P), jnp.float32)
    s_ref[H + 1:H + 2, :, :] = jnp.zeros((1, W, 3 * P), jnp.float32)
    s_ref[1:H + 1, 0:1, 0:P] = jnp.zeros((H, 1, P), jnp.float32)
    s_ref[1:H + 1, W - 1:W, 2 * P:3 * P] = jnp.zeros((H, 1, P), jnp.float32)
    s_ref[1:H + 1, 1:W, 0:P] = h1_3d[:, 0:W - 1, :]           # left shift  (kw=0)
    s_ref[1:H + 1, :, P:2 * P] = h1_3d                        # centered    (kw=1)
    s_ref[1:H + 1, 0:W - 1, 2 * P:3 * P] = h1_3d[:, 1:W, :]   # right shift (kw=2)

    acc = jnp.zeros((H * W, P), jnp.float32)
    for kh in range(3):                                       # 3 matmuls, K = 3P
        lhs = s_ref[kh:kh + H, :, :].reshape(H * W, 3 * P).astype(jnp.bfloat16)
        acc = acc + jnp.dot(lhs, w2_ref[kh],
                            preferred_element_type=jnp.float32)
    h2 = jnp.maximum(acc + b2_ref[...], 0.0)                  # (HW, P) f32

    # ---- conv3 (1x1) + bn3 + residual + relu ---------------------------------
    h3 = jnp.dot(h2.astype(jnp.bfloat16), w3_ref[...],
                 preferred_element_type=jnp.float32)
    out = jnp.maximum(h3 + b3_ref[...] + xf, 0.0)             # residual in f32
    o_ref[...] = out.reshape(1, H, W, Cin)


def bottleneck_forward(x_nhwc, kp):
    N, H, W, Cin = x_nhwc.shape
    P = kp["w1"].shape[1]
    Cout = 4 * P
    assert Cin == Cout, "downsample=None + stride=1 requires inplanes == planes*4"

    def const_spec(shape):
        return pl.BlockSpec(shape, lambda n, _s=shape: (0,) * len(_s))

    flops = 2 * N * H * W * (Cin * P + 9 * P * P + P * Cout)
    bytes_accessed = (N * H * W * Cin * 4 + N * H * W * Cout * 4
                      + 2 * (Cin * P + 9 * P * P + P * Cout)   # bf16 weights
                      + 4 * (P + P + Cout))                     # f32 biases

    return pl.pallas_call(
        bottleneck_kernel,
        out_shape=jax.ShapeDtypeStruct((N, H, W, Cout), jnp.float32),
        grid_spec=pltpu.PrefetchScalarGridSpec(
            num_scalar_prefetch=0,
            grid=(N,),
            in_specs=[
                pl.BlockSpec((1, H, W, Cin), lambda n: (n, 0, 0, 0)),
                const_spec((Cin, P)),            # conv1 weight (bf16, scale folded)
                const_spec((1, P)),              # bn1 bias (f32)
                const_spec((3, 3 * P, P)),       # conv2 weight (bf16, scale folded)
                const_spec((1, P)),              # bn2 bias
                const_spec((P, Cout)),           # conv3 weight (bf16, scale folded)
                const_spec((1, Cout)),           # bn3 bias
            ],
            out_specs=pl.BlockSpec((1, H, W, Cout), lambda n: (n, 0, 0, 0)),
            scratch_shapes=[pltpu.VMEM((H + 2, W, 3 * P), jnp.float32)],
        ),
        compiler_params=pltpu.CompilerParams(
            dimension_semantics=("parallel",)),
        cost_estimate=pl.CostEstimate(
            flops=flops, transcendentals=0, bytes_accessed=bytes_accessed),
    )(x_nhwc, kp["w1"], kp["b1"], kp["w2"], kp["b2"], kp["w3"], kp["b3"])


def init_params(key, inplanes, planes):
    # Raw f32 module parameters (conv weights in HWIO-matmul form, BN as
    # eval-mode scale/bias vectors).
    eps = 1e-5
    Cout = planes * 4
    ks = jax.random.split(key, 15)

    def bn(kg, kb, km, kv, c):
        gamma = jax.random.normal(kg, (c,), jnp.float32) * 0.1 + 1.0
        beta = jax.random.normal(kb, (c,), jnp.float32) * 0.1
        mean = jax.random.normal(km, (c,), jnp.float32) * 0.1
        var = jax.random.uniform(kv, (c,), jnp.float32, minval=0.5, maxval=1.5)
        scale = gamma / jnp.sqrt(var + eps)
        bias = beta - mean * scale
        return scale, bias

    w1 = jax.random.normal(ks[0], (inplanes, planes), jnp.float32) * 0.1
    w2 = jax.random.normal(ks[1], (3, 3, planes, planes), jnp.float32) * 0.1  # HWIO
    w3 = jax.random.normal(ks[2], (planes, Cout), jnp.float32) * 0.1
    s1, b1 = bn(ks[3], ks[4], ks[5], ks[6], planes)
    s2, b2 = bn(ks[7], ks[8], ks[9], ks[10], planes)
    s3, b3 = bn(ks[11], ks[12], ks[13], ks[14], Cout)
    return dict(w1=w1, w2=w2, w3=w3, s1=s1, b1=b1, s2=s2, b2=b2, s3=s3, b3=b3)


def prepare_kernel_params(p):
    # One-time wrapper-side prep: fold BN scales into conv weights, lay out the
    # 3x3 weight as (kh, kw*P + p_in, p_out) for the K=3P matmuls, cast to bf16.
    P = p["w1"].shape[1]
    Cout = p["w3"].shape[1]
    w1f = (p["w1"] * p["s1"][None, :]).astype(jnp.bfloat16)
    w2f = (p["w2"] * p["s2"][None, None, None, :]).reshape(3, 3 * P, P)
    w2f = w2f.astype(jnp.bfloat16)
    w3f = (p["w3"] * p["s3"][None, :]).astype(jnp.bfloat16)
    return dict(w1=w1f, b1=p["b1"].reshape(1, P),
                w2=w2f, b2=p["b2"].reshape(1, P),
                w3=w3f, b3=p["b3"].reshape(1, Cout))


def reference_forward(x_nhwc, p):
    # Pure-JAX f32 reference matching the PyTorch module (eval-mode BN).
    dn = ('NHWC', 'HWIO', 'NHWC')
    w1 = p["w1"].reshape(1, 1, *p["w1"].shape)
    h = lax.conv_general_dilated(x_nhwc, w1, (1, 1), 'VALID', dimension_numbers=dn)
    h = jnp.maximum(h * p["s1"] + p["b1"], 0.0)
    h = lax.conv_general_dilated(h, p["w2"], (1, 1), [(1, 1), (1, 1)],
                                 dimension_numbers=dn)
    h = jnp.maximum(h * p["s2"] + p["b2"], 0.0)
    w3 = p["w3"].reshape(1, 1, *p["w3"].shape)
    h = lax.conv_general_dilated(h, w3, (1, 1), 'VALID', dimension_numbers=dn)
    h = h * p["s3"] + p["b3"]
    return jnp.maximum(h + x_nhwc, 0.0)


if __name__ == "__main__":
    key = jax.random.PRNGKey(0)
    kx, kp = jax.random.split(key)

    planes = 4
    inplanes = planes * 4          # identity residual (downsample=None, stride=1)
    N, Hsp, Wsp = 2, 16, 16

    # Input is conceptually NCHW as in PyTorch: (2, 16, 16, 16)
    x_nchw = jax.random.normal(kx, (N, inplanes, Hsp, Wsp), jnp.float32)
    x_nhwc = jnp.transpose(x_nchw, (0, 2, 3, 1))

    params = init_params(kp, inplanes, planes)
    kparams = prepare_kernel_params(params)

    out = bottleneck_forward(x_nhwc, kparams)
    out = jax.block_until_ready(out)

    ref = reference_forward(x_nhwc, params)
    assert out.shape == (N, Hsp, Wsp, planes * 4)
    # bf16 matmul operands (f32 accumulation) vs. the pure-f32 reference:
    # expected deviation is O(1e-3); 2e-2 gives ample margin while still
    # catching any real bug (which would show O(0.1-1) errors).
    assert jnp.allclose(out, ref, atol=2e-2, rtol=2e-2), \
        "Pallas kernel mismatch vs reference"

    print("KERNEL_OK")
</pallas_src>

<mosaic_0001>
module attributes {stable_mosaic.version = 11 : i64} {
  func.func @bottleneck_kernel(%arg0: i32, %arg1: memref<1x16x16x16xf32, #tpu.memory_space<vmem>>, %arg2: memref<16x4xbf16, #tpu.memory_space<vmem>>, %arg3: memref<1x4xf32, #tpu.memory_space<vmem>>, %arg4: memref<3x12x4xbf16, #tpu.memory_space<vmem>>, %arg5: memref<1x4xf32, #tpu.memory_space<vmem>>, %arg6: memref<4x16xbf16, #tpu.memory_space<vmem>>, %arg7: memref<1x16xf32, #tpu.memory_space<vmem>>, %arg8: memref<1x16x16x16xf32, #tpu.memory_space<vmem>>, %arg9: memref<18x16x12xf32, #tpu.memory_space<vmem>>) attributes {dimension_semantics = [#tpu.dimension_semantics<parallel>], iteration_bounds = array<i64: 2>, scalar_prefetch = 0 : i64, scratch_operands = 1 : i64, tpu.core_type = #tpu.core_type<tc>, window_params = [{transform_indices = @transform_0, window_bounds = array<i64: 1, 16, 16, 16>}, {pipeline_mode = #tpu.pipeline_mode<synchronous>, transform_indices = @transform_1, window_bounds = array<i64: 16, 4>}, {pipeline_mode = #tpu.pipeline_mode<synchronous>, transform_indices = @transform_2, window_bounds = array<i64: 1, 4>}, {pipeline_mode = #tpu.pipeline_mode<synchronous>, transform_indices = @transform_3, window_bounds = array<i64: 3, 12, 4>}, {pipeline_mode = #tpu.pipeline_mode<synchronous>, transform_indices = @transform_4, window_bounds = array<i64: 1, 4>}, {pipeline_mode = #tpu.pipeline_mode<synchronous>, transform_indices = @transform_5, window_bounds = array<i64: 4, 16>}, {pipeline_mode = #tpu.pipeline_mode<synchronous>, transform_indices = @transform_6, window_bounds = array<i64: 1, 16>}, {transform_indices = @transform_7, window_bounds = array<i64: 1, 16, 16, 16>}]} {
    %c0 = arith.constant 0 : index
    %c0_0 = arith.constant 0 : index
    %c0_1 = arith.constant 0 : index
    %c0_2 = arith.constant 0 : index
    %0 = vector.load %arg1[%c0, %c0_0, %c0_1, %c0_2] : memref<1x16x16x16xf32, #tpu.memory_space<vmem>>, vector<1x16x16x16xf32>
    %1 = vector.shape_cast %0 : vector<1x16x16x16xf32> to vector<16x16x16xf32>
    %2 = vector.shape_cast %1 : vector<16x16x16xf32> to vector<256x16xf32>
    %3 = arith.truncf %2 : vector<256x16xf32> to vector<256x16xbf16>
    %c0_3 = arith.constant 0 : index
    %c0_4 = arith.constant 0 : index
    %4 = vector.load %arg2[%c0_3, %c0_4] : memref<16x4xbf16, #tpu.memory_space<vmem>>, vector<16x4xbf16>
    %cst = arith.constant dense<0.000000e+00> : vector<256x4xf32>
    %5 = tpu.matmul %3, %4, %cst {dimension_numbers = #tpu.dot_dimension_numbers<[1], [0], [0], [1], [0, 0, 1, 1], [], []>} : vector<256x16xbf16>, vector<16x4xbf16>, vector<256x4xf32> -> vector<256x4xf32>
    %c0_5 = arith.constant 0 : index
    %c0_6 = arith.constant 0 : index
    %6 = vector.load %arg3[%c0_5, %c0_6] : memref<1x4xf32, #tpu.memory_space<vmem>>, vector<1x4xf32>
    %7 = vector.broadcast %6 : vector<1x4xf32> to vector<256x4xf32>
    %8 = arith.addf %5, %7 : vector<256x4xf32>
    %cst_7 = arith.constant 0.000000e+00 : f32
    %9 = vector.broadcast %cst_7 : f32 to vector<256x4xf32>
    %10 = arith.maximumf %8, %9 : vector<256x4xf32>
    %11 = vector.shape_cast %10 : vector<256x4xf32> to vector<16x16x4xf32>
    %cst_8 = arith.constant 0.000000e+00 : f32
    %12 = vector.broadcast %cst_8 : f32 to vector<1x16x12xf32>
    %c0_9 = arith.constant 0 : index
    %c0_10 = arith.constant 0 : index
    %c0_11 = arith.constant 0 : index
    %13 = vector.load %arg9[%c0_9, %c0_10, %c0_11] : memref<18x16x12xf32, #tpu.memory_space<vmem>>, vector<1x16x12xf32>
    tpu.vector_store %arg9[%c0_9, %c0_10, %c0_11], %12 {strides = array<i32>} : memref<18x16x12xf32, #tpu.memory_space<vmem>>, vector<1x16x12xf32>,
    %cst_12 = arith.constant 0.000000e+00 : f32
    %14 = vector.broadcast %cst_12 : f32 to vector<1x16x12xf32>
    %c17 = arith.constant 17 : index
    %c0_13 = arith.constant 0 : index
    %c0_14 = arith.constant 0 : index
    %15 = vector.load %arg9[%c17, %c0_13, %c0_14] : memref<18x16x12xf32, #tpu.memory_space<vmem>>, vector<1x16x12xf32>
    tpu.vector_store %arg9[%c17, %c0_13, %c0_14], %14 {strides = array<i32>} : memref<18x16x12xf32, #tpu.memory_space<vmem>>, vector<1x16x12xf32>,
    %cst_15 = arith.constant 0.000000e+00 : f32
    %16 = vector.broadcast %cst_15 : f32 to vector<16x1x4xf32>
    %c1 = arith.constant 1 : index
    %c0_16 = arith.constant 0 : index
    %c0_17 = arith.constant 0 : index
    %17 = vector.load %arg9[%c1, %c0_16, %c0_17] : memref<18x16x12xf32, #tpu.memory_space<vmem>>, vector<16x1x4xf32>
    tpu.vector_store %arg9[%c1, %c0_16, %c0_17], %16 {strides = array<i32>} : memref<18x16x12xf32, #tpu.memory_space<vmem>>, vector<16x1x4xf32>,
    %cst_18 = arith.constant 0.000000e+00 : f32
    %18 = vector.broadcast %cst_18 : f32 to vector<16x1x4xf32>
    %c1_19 = arith.constant 1 : index
    %c15 = arith.constant 15 : index
    %c8 = arith.constant 8 : index
    %19 = vector.load %arg9[%c1_19, %c15, %c8] : memref<18x16x12xf32, #tpu.memory_space<vmem>>, vector<16x1x4xf32>
    tpu.vector_store %arg9[%c1_19, %c15, %c8], %18 {strides = array<i32>} : memref<18x16x12xf32, #tpu.memory_space<vmem>>, vector<16x1x4xf32>,
    %20 = vector.extract_strided_slice %11 {offsets = [0, 0, 0], sizes = [16, 15, 4], strides = [1, 1, 1]} : vector<16x16x4xf32> to vector<16x15x4xf32>
    %c1_20 = arith.constant 1 : index
    %c1_21 = arith.constant 1 : index
    %c0_22 = arith.constant 0 : index
    %21 = vector.load %arg9[%c1_20, %c1_21, %c0_22] : memref<18x16x12xf32, #tpu.memory_space<vmem>>, vector<16x15x4xf32>
    tpu.vector_store %arg9[%c1_20, %c1_21, %c0_22], %20 {strides = array<i32>} : memref<18x16x12xf32, #tpu.memory_space<vmem>>, vector<16x15x4xf32>,
    %c1_23 = arith.constant 1 : index
    %c0_24 = arith.constant 0 : index
    %c4 = arith.constant 4 : index
    %22 = vector.load %arg9[%c1_23, %c0_24, %c4] : memref<18x16x12xf32, #tpu.memory_space<vmem>>, vector<16x16x4xf32>
    tpu.vector_store %arg9[%c1_23, %c0_24, %c4], %11 {strides = array<i32>} : memref<18x16x12xf32, #tpu.memory_space<vmem>>, vector<16x16x4xf32>,
    %23 = vector.extract_strided_slice %11 {offsets = [0, 1, 0], sizes = [16, 15, 4], strides = [1, 1, 1]} : vector<16x16x4xf32> to vector<16x15x4xf32>
    %c1_25 = arith.constant 1 : index
    %c0_26 = arith.constant 0 : index
    %c8_27 = arith.constant 8 : index
    %24 = vector.load %arg9[%c1_25, %c0_26, %c8_27] : memref<18x16x12xf32, #tpu.memory_space<vmem>>, vector<16x15x4xf32>
    tpu.vector_store %arg9[%c1_25, %c0_26, %c8_27], %23 {strides = array<i32>} : memref<18x16x12xf32, #tpu.memory_space<vmem>>, vector<16x15x4xf32>,
    %cst_28 = arith.constant 0.000000e+00 : f32
    %25 = vector.broadcast %cst_28 : f32 to vector<256x4xf32>
    %c0_29 = arith.constant 0 : index
    %c0_30 = arith.constant 0 : index
    %c0_31 = arith.constant 0 : index
    %26 = vector.load %arg9[%c0_29, %c0_30, %c0_31] : memref<18x16x12xf32, #tpu.memory_space<vmem>>, vector<16x16x12xf32>
    %27 = vector.shape_cast %26 : vector<16x16x12xf32> to vector<256x12xf32>
    %28 = arith.truncf %27 : vector<256x12xf32> to vector<256x12xbf16>
    %c0_32 = arith.constant 0 : index
    %c0_33 = arith.constant 0 : index
    %c0_34 = arith.constant 0 : index
    %29 = vector.load %arg4[%c0_32, %c0_33, %c0_34] : memref<3x12x4xbf16, #tpu.memory_space<vmem>>, vector<1x12x4xbf16>
    %30 = vector.shape_cast %29 : vector<1x12x4xbf16> to vector<12x4xbf16>
    %cst_35 = arith.constant dense<0.000000e+00> : vector<256x4xf32>
    %31 = tpu.matmul %28, %30, %cst_35 {dimension_numbers = #tpu.dot_dimension_numbers<[1], [0], [0], [1], [0, 0, 1, 1], [], []>} : vector<256x12xbf16>, vector<12x4xbf16>, vector<256x4xf32> -> vector<256x4xf32>
    %32 = arith.addf %25, %31 : vector<256x4xf32>
    %c1_36 = arith.constant 1 : index
    %c0_37 = arith.constant 0 : index
    %c0_38 = arith.constant 0 : index
    %33 = vector.load %arg9[%c1_36, %c0_37, %c0_38] : memref<18x16x12xf32, #tpu.memory_space<vmem>>, vector<16x16x12xf32>
    %34 = vector.shape_cast %33 : vector<16x16x12xf32> to vector<256x12xf32>
    %35 = arith.truncf %34 : vector<256x12xf32> to vector<256x12xbf16>
    %c1_39 = arith.constant 1 : index
    %c0_40 = arith.constant 0 : index
    %c0_41 = arith.constant 0 : index
    %36 = vector.load %arg4[%c1_39, %c0_40, %c0_41] : memref<3x12x4xbf16, #tpu.memory_space<vmem>>, vector<1x12x4xbf16>
    %37 = vector.shape_cast %36 : vector<1x12x4xbf16> to vector<12x4xbf16>
    %cst_42 = arith.constant dense<0.000000e+00> : vector<256x4xf32>
    %38 = tpu.matmul %35, %37, %cst_42 {dimension_numbers = #tpu.dot_dimension_numbers<[1], [0], [0], [1], [0, 0, 1, 1], [], []>} : vector<256x12xbf16>, vector<12x4xbf16>, vector<256x4xf32> -> vector<256x4xf32>
    %39 = arith.addf %32, %38 : vector<256x4xf32>
    %c2 = arith.constant 2 : index
    %c0_43 = arith.constant 0 : index
    %c0_44 = arith.constant 0 : index
    %40 = vector.load %arg9[%c2, %c0_43, %c0_44] : memref<18x16x12xf32, #tpu.memory_space<vmem>>, vector<16x16x12xf32>
    %41 = vector.shape_cast %40 : vector<16x16x12xf32> to vector<256x12xf32>
    %42 = arith.truncf %41 : vector<256x12xf32> to vector<256x12xbf16>
    %c2_45 = arith.constant 2 : index
    %c0_46 = arith.constant 0 : index
    %c0_47 = arith.constant 0 : index
    %43 = vector.load %arg4[%c2_45, %c0_46, %c0_47] : memref<3x12x4xbf16, #tpu.memory_space<vmem>>, vector<1x12x4xbf16>
    %44 = vector.shape_cast %43 : vector<1x12x4xbf16> to vector<12x4xbf16>
    %cst_48 = arith.constant dense<0.000000e+00> : vector<256x4xf32>
    %45 = tpu.matmul %42, %44, %cst_48 {dimension_numbers = #tpu.dot_dimension_numbers<[1], [0], [0], [1], [0, 0, 1, 1], [], []>} : vector<256x12xbf16>, vector<12x4xbf16>, vector<256x4xf32> -> vector<256x4xf32>
    %46 = arith.addf %39, %45 : vector<256x4xf32>
    %c0_49 = arith.constant 0 : index
    %c0_50 = arith.constant 0 : index
    %47 = vector.load %arg5[%c0_49, %c0_50] : memref<1x4xf32, #tpu.memory_space<vmem>>, vector<1x4xf32>
    %48 = vector.broadcast %47 : vector<1x4xf32> to vector<256x4xf32>
    %49 = arith.addf %46, %48 : vector<256x4xf32>
    %cst_51 = arith.constant 0.000000e+00 : f32
    %50 = vector.broadcast %cst_51 : f32 to vector<256x4xf32>
    %51 = arith.maximumf %49, %50 : vector<256x4xf32>
    %52 = arith.truncf %51 : vector<256x4xf32> to vector<256x4xbf16>
    %c0_52 = arith.constant 0 : index
    %c0_53 = arith.constant 0 : index
    %53 = vector.load %arg6[%c0_52, %c0_53] : memref<4x16xbf16, #tpu.memory_space<vmem>>, vector<4x16xbf16>
    %cst_54 = arith.constant dense<0.000000e+00> : vector<256x16xf32>
    %54 = tpu.matmul %52, %53, %cst_54 {dimension_numbers = #tpu.dot_dimension_numbers<[1], [0], [0], [1], [0, 0, 1, 1], [], []>} : vector<256x4xbf16>, vector<4x16xbf16>, vector<256x16xf32> -> vector<256x16xf32>
    %c0_55 = arith.constant 0 : index
    %c0_56 = arith.constant 0 : index
    %55 = vector.load %arg7[%c0_55, %c0_56] : memref<1x16xf32, #tpu.memory_space<vmem>>, vector<1x16xf32>
    %56 = vector.broadcast %55 : vector<1x16xf32> to vector<256x16xf32>
    %57 = arith.addf %54, %56 : vector<256x16xf32>
    %58 = arith.addf %57, %2 : vector<256x16xf32>
    %cst_57 = arith.constant 0.000000e+00 : f32
    %59 = vector.broadcast %cst_57 : f32 to vector<256x16xf32>
    %60 = arith.maximumf %58, %59 : vector<256x16xf32>
    %61 = vector.shape_cast %60 : vector<256x16xf32> to vector<1x16x16x16xf32>
    %c0_58 = arith.constant 0 : index
    %c0_59 = arith.constant 0 : index
    %c0_60 = arith.constant 0 : index
    %c0_61 = arith.constant 0 : index
    %62 = vector.load %arg8[%c0_58, %c0_59, %c0_60, %c0_61] : memref<1x16x16x16xf32, #tpu.memory_space<vmem>>, vector<1x16x16x16xf32>
    tpu.vector_store %arg8[%c0_58, %c0_59, %c0_60, %c0_61], %61 {strides = array<i32>} : memref<1x16x16x16xf32, #tpu.memory_space<vmem>>, vector<1x16x16x16xf32>,
    return
  }
  func.func @transform_0(%arg0: i32) -> (i32, i32, i32, i32) {
    %c0_i32 = arith.constant 0 : i32
    %c0_i32_0 = arith.constant 0 : i32
    %c0_i32_1 = arith.constant 0 : i32
    %c0_i32_2 = arith.constant 0 : i32
    return %arg0, %c0_i32, %c0_i32_0, %c0_i32_1 : i32, i32, i32, i32
  }
  func.func @transform_1(%arg0: i32) -> (i32, i32) {
    %c0_i32 = arith.constant 0 : i32
    %c0_i32_0 = arith.constant 0 : i32
    %c0_i32_1 = arith.constant 0 : i32
    return %c0_i32, %c0_i32_0 : i32, i32
  }
  func.func @transform_2(%arg0: i32) -> (i32, i32) {
    %c0_i32 = arith.constant 0 : i32
    %c0_i32_0 = arith.constant 0 : i32
    %c0_i32_1 = arith.constant 0 : i32
    return %c0_i32, %c0_i32_0 : i32, i32
  }
  func.func @transform_3(%arg0: i32) -> (i32, i32, i32) {
    %c0_i32 = arith.constant 0 : i32
    %c0_i32_0 = arith.constant 0 : i32
    %c0_i32_1 = arith.constant 0 : i32
    %c0_i32_2 = arith.constant 0 : i32
    return %c0_i32, %c0_i32_0, %c0_i32_1 : i32, i32, i32
  }
  func.func @transform_4(%arg0: i32) -> (i32, i32) {
    %c0_i32 = arith.constant 0 : i32
    %c0_i32_0 = arith.constant 0 : i32
    %c0_i32_1 = arith.constant 0 : i32
    return %c0_i32, %c0_i32_0 : i32, i32
  }
  func.func @transform_5(%arg0: i32) -> (i32, i32) {
    %c0_i32 = arith.constant 0 : i32
    %c0_i32_0 = arith.constant 0 : i32
    %c0_i32_1 = arith.constant 0 : i32
    return %c0_i32, %c0_i32_0 : i32, i32
  }
  func.func @transform_6(%arg0: i32) -> (i32, i32) {
    %c0_i32 = arith.constant 0 : i32
    %c0_i32_0 = arith.constant 0 : i32
    %c0_i32_1 = arith.constant 0 : i32
    return %c0_i32, %c0_i32_0 : i32, i32
  }
  func.func @transform_7(%arg0: i32) -> (i32, i32, i32, i32) {
    %c0_i32 = arith.constant 0 : i32
    %c0_i32_0 = arith.constant 0 : i32
    %c0_i32_1 = arith.constant 0 : i32
    %c0_i32_2 = arith.constant 0 : i32
    return %arg0, %c0_i32, %c0_i32_0, %c0_i32_1 : i32, i32, i32, i32
  }
}

</mosaic_0001>

<bundles_post_ra>
// kernel: tpu_custom_call.1
= control target key start
LH: loop header
LB: loop body
LE: loop exit
PB: predicated region body
PF: predicated region fallthrough
CT: control target
= control target key end

     0   :  { %12 = vsyncpa [#allocation4], 0  ;;  %s3832_s0 = inlined_call_operand.hbm [shape: f32[2,16,16,16], index: 0, kind: input, shape index: {}]   ;;  %s3833_s1 = inlined_call_operand.vmem [shape: bf16[16,4], index: 1, kind: input, shape index: {}]   ;;  %s3834_s2 = inlined_call_operand.vmem [shape: f32[1,4], index: 2, kind: input, shape index: {}]   ;;  %s3835_s3 = inlined_call_operand.vmem [shape: bf16[3,12,4], index: 3, kind: input, shape index: {}]   ;;  %s3836_s4 = inlined_call_operand.vmem [shape: f32[1,4], index: 4, kind: input, shape index: {}]   ;;  %s3837_s5 = inlined_call_operand.vmem [shape: bf16[4,16], index: 5, kind: input, shape index: {}]   ;;  %s3838_s6 = inlined_call_operand.vmem [shape: f32[1,16], index: 6, kind: input, shape index: {}]   ;;  %s3839_s7 = inlined_call_operand.hbm [shape: f32[2,16,16,16], index: 7, kind: output, shape index: {}]  }
   0x1   :  { %14 = vsyncpa [#allocation4 + $0x1], 0 }
   0x2   :  { %15 = vsyncpa [#allocation5], 0 }
   0x3   :  { %17 = vsyncpa [#allocation5 + $0x1], 0  ;;  %s2964_s24 = smov 0   ;;  %s2966_s25 = smov 0  }
   0x4   :  { %s2968_s26 = smov 0   ;;  %s2970_s27 = smov 0  }
   0x5 LB: > { %s2985_s28 = sadd.s32 4294967295, %s2914_s27   ;;  %s2297_s29 = sadd.s32 4294967294, %s2914_s27   ;;  %s2914_s27 = sphi %s2970_s27, %s3852_s27   ;;  %s2910_s26 = sphi %s2968_s26, %s3851_s26   ;;  %s2906_s25 = sphi %s2966_s25, %s3850_s25   ;;  %s2902_s24 = sphi %s2964_s24, %s3849_s24  }
   0x6   : > { %s2989_s30 = sadd.s32 1, %s2914_s27   ;;  %s30_s8 = sadd.s32 1, %s2910_s26 }
   0x7   : > { %s27_s9 = ssub.s32 %s2914_s27, %s2989_s30  ;;  %p37_p0 = scmp.ne.s32.totalorder %s2910_s26, %s2906_s25 }
   0x8   : > { %p28_p1 = scmp.eq.s32.totalorder %s27_s9, 0  ;;  %p38_p2 = scmp.eq.s32.totalorder %s2914_s27, 0 }
   0x9   : > { %p43_p3 = scmp.ne.s32.totalorder %s2906_s25, %s2902_s24  ;;  %p44_p4 = scmp.eq.s32.totalorder %s2985_s28, 0 }
   0xa   : > { %s3001_s10 = scalar_select %p28_p1, %s2910_s26, %s30_s8  }
   0xb   : > { %p3003_p5 = por %p38_p2, %p37_p0  ;;  %p3007_p6 = por %p44_p4, %p43_p3 }
   0xc   : > { %p193_p7 = scmp.eq.s32.totalorder %s2985_s28, 1  ;;  %p199_p8 = scmp.eq.s32.totalorder %s2297_s29, 1 }
   0xd   : > { %p2742_p10 = scmp.lt.s32.totalorder %s2914_s27, 2  ;;  %s237_s15 = sand.u32 1, %s2910_s26  }
   0xe   : > { %p3014_p11 = por %p193_p7, %p37_p0  ;;  %p3018_p12 = por %p199_p8, %p43_p3 }
   0xf   : > { %s2402_s16 = sshll.u32 %s2914_s27, 12  ;;  %s2300_s17 = sshll.u32 %s237_s15, 8 }
  0x10   : > { %s3843_s13 = scalar_select %p3014_p11, 1, 0 }
  0x11   : > { %s3844_s14 = scalar_select %p3018_p12, 1, 0 }
  0x12   : > { %s3027_s20 = scalar_lea.hbm %s3832_s0, %s2402_s16  ;;  %s241_s21 = scalar_lea.vmem [#allocation3], %s2300_s17 }
  0x13   : > { %s248_s22 = sshll.u32 %s241_s21, 4  ;;  %p3031_p13 = pnand %p2742_p10, %p3003_p5  ;;  %s3035_s22 = int_to_ptr.vmem [resolvable:$true] %s248_s22 }
  0x14   : > { %s3037_s29 = scalar_lea.sflag [#allocation4], %s237_s15  ;;  %s2818_s8 = scalar_lea.hbm %s3027_s20, 4096 }
  0x15   : > { %p2819_p0 = scmp.ne.s32.totalorder %s3027_s20, %s2818_s8  ;;  %p2820_p1 = pneg %p3031_p13 }
  0x16   : > { %s2823_s16 = scalar_lea.hbm %s3832_s0, 8192  ;;  %p2824_p4 = scmp.lt.u32.totalorder %s3027_s20, %s3832_s0 }
  0x17   : > { %p2821_p2 = pnand %p2820_p1, %p2819_p0  ;;  %p2825_p5 = scmp.lt.u32.totalorder %s2823_s16, %s2818_s8 }
  0x18   : > { %p2827_p8 = scmp.lt.u32.totalorder %s2818_s8, %s3027_s20 }
  0x19   : > { %p2822_p3 = pneg %p2821_p2  ;;  %p2826_p7 = por %p2825_p5, %p2824_p4 }
  0x1b   : > { %p2828_p10 = por %p2827_p8, %p2826_p7 }
  0x1d   : > { %p2829_p9 = pnand %p2828_p10, %p2822_p3 }
  0x1f   : > { %2832 = shalt.err (!%p2829_p9)
}
  0x20   : > { %s2833_s15 = scalar_lea.vmem %s3035_s22, 4096  ;;  %s2916_s19 = smov [#allocation3]  }
  0x21   : > { %p2834_p0 = scmp.ne.s32.totalorder %s3035_s22, %s2833_s15  ;;  %s2838_s21 = sshll.u32 %s2916_s19, 4  ;;  %s2839_s21 = int_to_ptr.vmem [resolvable:$false] %s2838_s21 }
  0x22   : > { %s2840_s9 = scalar_lea.vmem %s2839_s21, 8192  ;;  %p2841_p11 = scmp.lt.s32.totalorder %s3035_s22, %s2839_s21 }
  0x23   : > { %p2836_p2 = pnand %p2834_p0, %p2820_p1  ;;  %p2842_p4 = scmp.lt.s32.totalorder %s2840_s9, %s2833_s15 }
  0x25   : > { %p2837_p12 = pneg %p2836_p2  ;;  %p2843_p5 = por %p2842_p4, %p2841_p11 }
  0x27   : > { %p2844_p7 = pnand %p2843_p5, %p2837_p12 }
  0x29   : > { %2847 = shalt.err (!%p2844_p7)
}
  0x2a   : > { %s2917_s8 = smov 128   ;;  %s2918_s11 = smov 8  }
  0x2b   : > { %2737 = dma.hbm_to_vmem [thread:$0]  (!%p3031_p13), %s3027_s20, 4096, %s3035_s22, %s3037_s29, %s2917_s8, %s2917_s8, %s2918_s11  }
  0x2c   : > { %p2303_p9 = scmp.ge.s32.totalorder %s2914_s27, 1  ;;  %p256_p1 = scmp.lt.s32.totalorder %s2914_s27, 3 }
  0x2e   : > { %p257_p3 = pnand %p2303_p9, %p256_p1 }
  0x2f   : > { %s3068_s16 = sand.u32 (!%p257_p3), 1, %s2906_s25  }
  0x30   : > { %260 = sbr.rel (%p257_p3) target bundleno = 1084 (0x43c), region = 48  ;;  %s2304_s17 = sshll.u32 (!%p257_p3), %s3068_s16, 8 }
  0x31   : > { %s263_s18 = scalar_lea.sflag (!%p257_p3), [#allocation4], %s3068_s16  ;;  %s3074_s15 = scalar_lea.vmem (!%p257_p3), [#allocation3], %s2304_s17 }
  0x37   : > { %2893 = dma.done.wait (%p3007_p6), %s263_s18, 4096  }
  0x38   : > { %2895 = vsyncadd (%p3007_p6), %s263_s18, 4294963200  ;;  %v2782_v0 = vld [vmem:[%s3833_s1] sm:$0xff]   ;;  %v299_v2 = vld [vmem:[%s3074_s15 + $0x8] sm:$0xff]  ;;  %vm361_vm0 = vcmask 130048   ;;  %vm627_vm1 = vcmask 90176   ;;  %v2919_v49 = vmov 0.0  }
  0x39   : > { %v298_v1 = vld [vmem:[%s3074_s15] sm:$0xff]  ;;  %v300_v3 = vld [vmem:[%s3074_s15 + $0x10] sm:$0xff]  ;;  %2489 = vmatprep.subr.bf16.mxu0 %v2782_v0  ;;  %v301_v5 = vld [vmem:[%s3074_s15 + $0x18] sm:$0xff]  ;;  %629 = vst.msk [vmem:[#allocation2 + $0x2f] sm:$0x1] %vm627_vm1, %v2919_v49  ;;  %vm610_vm2 = vcmask 24576  }
  0x3a   : > { %v330_v4 = vpack.c.bf16 %v299_v2, %v298_v1  ;;  %v302_v6 = vld [vmem:[%s3074_s15 + $0x20] sm:$0xff]  ;;  %v303_v7 = vld [vmem:[%s3074_s15 + $0x28] sm:$0xff]  ;;  %2490 = vmatpush3.bf16.msra.mxu0 %v2782_v0  ;;  %v331_v8 = vpack.c.bf16 %v301_v5, %v300_v3  ;;  %v304_v10 = vld [vmem:[%s3074_s15 + $0x30] sm:$0xff]  ;;  %628 = vst.msk [vmem:[#allocation2 + $0x1f] sm:$0x1] %vm627_vm1, %v2919_v49  ;;  %vm644_vm3 = vcmask 31744  }
  0x3b   : > { %v332_v9 = vpack.c.bf16 %v303_v7, %v302_v6  ;;  %v305_v11 = vld [vmem:[%s3074_s15 + $0x38] sm:$0xff]  ;;  %v306_v12 = vld [vmem:[%s3074_s15 + $0x40] sm:$0xff]  ;;  %v307_v13 = vld [vmem:[%s3074_s15 + $0x48] sm:$0xff]  ;;  %630 = vst.msk [vmem:[#allocation2 + $0x3f] sm:$0x1] %vm627_vm1, %v2919_v49  ;;  %vm646_vm4 = vcmask 30720  }
  0x3c   : > { %2491 = vmatprep.mubr.msk.bf16.mxu0 %vm361_vm0, %v330_v4  ;;  %v333_v14 = vpack.c.bf16 %v305_v11, %v304_v10  ;;  %v334_v15 = vpack.c.bf16 %v307_v13, %v306_v12  ;;  %v308_v16 = vld [vmem:[%s3074_s15 + $0x50] sm:$0xff]  ;;  %v309_v17 = vld [vmem:[%s3074_s15 + $0x58] sm:$0xff]  ;;  %v310_v18 = vld [vmem:[%s3074_s15 + $0x60] sm:$0xff]  ;;  %631 = vst.msk [vmem:[#allocation2 + $0x4f] sm:$0x1] %vm627_vm1, %v2919_v49  ;;  %s2920_s29 = smov 4  }
  0x3d   : > { %2492 = vmatmul.mubr.msk.bf16.vlgmr.msra.gmra.mrb[0].mxu0 %vm361_vm0, %v331_v8  ;;  %v311_v19 = vld [vmem:[%s3074_s15 + $0x68] sm:$0xff]  ;;  %v335_v20 = vpack.c.bf16 %v309_v17, %v308_v16  ;;  %v312_v22 = vld [vmem:[%s3074_s15 + $0x70] sm:$0xff]  ;;  %v313_v23 = vld [vmem:[%s3074_s15 + $0x78] sm:$0xff]  ;;  %632 = vst.msk [vmem:[#allocation2 + $0x5f] sm:$0x1] %vm627_vm1, %v2919_v49  ;;  %s2921_s19 = smov 8  }
  0x3e   : > { %2495 = vmatprep.mubr.msk.bf16.mxu0 %vm361_vm0, %v332_v9  ;;  %v336_v21 = vpack.c.bf16 %v311_v19, %v310_v18  ;;  %v314_v24 = vld [vmem:[%s3074_s15 + $0x80] sm:$0xff]  ;;  %v315_v25 = vld [vmem:[%s3074_s15 + $0x88] sm:$0xff]  ;;  %v337_v26 = vpack.c.bf16 %v313_v23, %v312_v22  ;;  %v316_v28 = vld [vmem:[%s3074_s15 + $0x90] sm:$0xff]  ;;  %633 = vst.msk [vmem:[#allocation2 + $0x6f] sm:$0x1] %vm627_vm1, %v2919_v49  ;;  %vm1123_vm5 = vcmask 1045504  }
  0x3f   : > { %v338_v27 = vpack.c.bf16 %v315_v25, %v314_v24  ;;  %v317_v29 = vld [vmem:[%s3074_s15 + $0x98] sm:$0xff]  ;;  %v318_v30 = vld [vmem:[%s3074_s15 + $0xa0] sm:$0xff]  ;;  %v319_v31 = vld [vmem:[%s3074_s15 + $0xa8] sm:$0xff]  ;;  %634 = vst.msk [vmem:[#allocation2 + $0x7f] sm:$0x1] %vm627_vm1, %v2919_v49  ;;  %vm603_vm6 = vcmask 97280  }
  0x40   : > { %v339_v32 = vpack.c.bf16 %v317_v29, %v316_v28  ;;  %v340_v33 = vpack.c.bf16 %v319_v31, %v318_v30  ;;  %v320_v34 = vld [vmem:[%s3074_s15 + $0xb0] sm:$0xff]  ;;  %v321_v35 = vld [vmem:[%s3074_s15 + $0xb8] sm:$0xff]  ;;  %v322_v36 = vld [vmem:[%s3074_s15 + $0xc0] sm:$0xff]  ;;  %635 = vst.msk [vmem:[#allocation2 + $0x8f] sm:$0x1] %vm627_vm1, %v2919_v49  ;;  %vm806_vm7 = vcmask 64544  }
  0x41   : > { %v323_v37 = vld [vmem:[%s3074_s15 + $0xc8] sm:$0xff]  ;;  %v341_v38 = vpack.c.bf16 %v321_v35, %v320_v34  ;;  %v324_v40 = vld [vmem:[%s3074_s15 + $0xd0] sm:$0xff]  ;;  %v325_v41 = vld [vmem:[%s3074_s15 + $0xd8] sm:$0xff]  ;;  %636 = vst.msk [vmem:[#allocation2 + $0x9f] sm:$0x1] %vm627_vm1, %v2919_v49  ;;  %vm935_vm8 = vcmask 97345  }
  0x42   : > { %v342_v39 = vpack.c.bf16 %v323_v37, %v322_v36  ;;  %v326_v42 = vld [vmem:[%s3074_s15 + $0xe0] sm:$0xff]  ;;  %v327_v43 = vld [vmem:[%s3074_s15 + $0xe8] sm:$0xff]  ;;  %v343_v44 = vpack.c.bf16 %v325_v41, %v324_v40  ;;  %v328_v46 = vld [vmem:[%s3074_s15 + $0xf0] sm:$0xff]  ;;  %637 = vst.msk [vmem:[#allocation2 + $0xaf] sm:$0x1] %vm627_vm1, %v2919_v49  ;;  %vm937_vm9 = vcmask 97344  }
  0x43   : > { %v344_v45 = vpack.c.bf16 %v327_v43, %v326_v42  ;;  %v329_v47 = vld [vmem:[%s3074_s15 + $0xf8] sm:$0xff]  ;;  %638 = vst.msk [vmem:[#allocation2 + $0xbf] sm:$0x1] %vm627_vm1, %v2919_v49  ;;  %639 = vst.msk [vmem:[#allocation2 + $0xcf] sm:$0x1] %vm627_vm1, %v2919_v49  ;;  %vm1949_vm10 = vcmask 1041408  }
  0x44   : > { %v345_v48 = vpack.c.bf16 %v329_v47, %v328_v46  ;;  %640 = vst.msk [vmem:[#allocation2 + $0xdf] sm:$0x1] %vm627_vm1, %v2919_v49  ;;  %641 = vst.msk [vmem:[#allocation2 + $0xef] sm:$0x1] %vm627_vm1, %v2919_v49  ;;  %v3198_v50 = vld [vmem:[%s3834_s2] ss:$0 sm:$0xff] }
  0x45   : > { %2496 = vmatmul.mubr.msk.bf16.gmra.mrb[4].mxu0 %vm361_vm0, %v333_v14  ;;  %642 = vst.msk [vmem:[#allocation2 + $0xff] sm:$0x1] %vm627_vm1, %v2919_v49  ;;  %643 = vst.msk [vmem:[#allocation2 + $0x10f] sm:$0x1] %vm627_vm1, %v2919_v49  ;;  %v2783_v7 = vld [vmem:[%s3835_s3 + $0x8] sm:$0x3f]  }
  0x46   : > { %2499 = vmatprep.mubr.msk.bf16.mxu0 %vm361_vm0, %v334_v15  ;;  %612 = vst.msk [vmem:[#allocation2 + $0x20] sm:$0x1] %vm610_vm2, %v2919_v49  ;;  %611 = vst.msk [vmem:[#allocation2 + $0x10] sm:$0x1] %vm610_vm2, %v2919_v49  ;;  %2725 = vmatprep.subr.msk.bf16.mxu0 %vm1123_vm5, %v2783_v7  ;;  %v1125_v11 = vsel %vm1123_vm5, %v2783_v7, 0  ;;  %s3658_s8 = scalar_lea.vmem [#allocation6], %s2304_s17 }
  0x47   : > { %613 = vst.msk [vmem:[#allocation2 + $0x30] sm:$0x1] %vm610_vm2, %v2919_v49  ;;  %614 = vst.msk [vmem:[#allocation2 + $0x40] sm:$0x1] %vm610_vm2, %v2919_v49  ;;  %2524 = vmatpush3.bf16.msra.mxu0 %v1125_v11  ;;  %2726 = vmatprep.subr.msk.bf16.mxu1 %vm1123_vm5, %v2783_v7  ;;  %s2403_s17 = sshll.u32 %s2985_s28, 12  ;;  %s2224_s11 = sshll.u32 %s3658_s8, 4  ;;  %s3783_s11 = int_to_ptr.vmem [resolvable:$true] %s2224_s11 }
  0x48   : > { %615 = vst.msk [vmem:[#allocation2 + $0x50] sm:$0x1] %vm610_vm2, %v2919_v49  ;;  %616 = vst.msk [vmem:[#allocation2 + $0x60] sm:$0x1] %vm610_vm2, %v2919_v49  ;;  %2660 = vmatpush3.bf16.msra.mxu1 %v1125_v11  ;;  %s3779_s22 = scalar_lea.hbm %s3839_s7, %s2403_s17  ;;  %s2211_s28 = scalar_lea.sflag [#allocation5], %s3068_s16 }
  0x49   : > { %617 = vst.msk [vmem:[#allocation2 + $0x70] sm:$0x1] %vm610_vm2, %v2919_v49  ;;  %618 = vst.msk [vmem:[#allocation2 + $0x80] sm:$0x1] %vm610_vm2, %v2919_v49  ;;  %p3846_p11 = scmp.ne.s32.totalorder %s3843_s13, 0  ;;  %s2922_s12 = smov [#allocation6]  }
  0x4a   : > { %619 = vst.msk [vmem:[#allocation2 + $0x90] sm:$0x1] %vm610_vm2, %v2919_v49  ;;  %620 = vst.msk [vmem:[#allocation2 + $0xa0] sm:$0x1] %vm610_vm2, %v2919_v49  ;;  %s2852_s23 = sshll.u32 %s2922_s12, 4  ;;  %s2853_s23 = int_to_ptr.vmem [resolvable:$false] %s2852_s23 }
  0x4b   : > { %621 = vst.msk [vmem:[#allocation2 + $0xb0] sm:$0x1] %vm610_vm2, %v2919_v49  ;;  %622 = vst.msk [vmem:[#allocation2 + $0xc0] sm:$0x1] %vm610_vm2, %v2919_v49  ;;  %p2855_p8 = scmp.lt.s32.totalorder %s3783_s11, %s2853_s23 }
  0x4c   : > { %623 = vst.msk [vmem:[#allocation2 + $0xd0] sm:$0x1] %vm610_vm2, %v2919_v49  ;;  %624 = vst.msk [vmem:[#allocation2 + $0xe0] sm:$0x1] %vm610_vm2, %v2919_v49 }
  0x4d   : > { %2500 = vmatmul.mubr.msk.bf16.gmra.mrb[8].mxu0 %vm361_vm0, %v335_v20  ;;  %625 = vst.msk [vmem:[#allocation2 + $0xf0] sm:$0x1] %vm610_vm2, %v2919_v49  ;;  %626 = vst.msk [vmem:[#allocation2 + $0x100] sm:$0x1] %vm610_vm2, %v2919_v49 }
  0x4e   : > { %2503 = vmatprep.mubr.msk.bf16.mxu0 %vm361_vm0, %v336_v21  ;;  %604 = vst.msk [vmem:[#allocation2] sm:$0xff] %vm603_vm6, %v2919_v49  ;;  %605 = vst.msk [vmem:[#allocation2 + $0x8] sm:$0xff] %vm603_vm6, %v2919_v49 }
  0x4f   : > { %607 = vst.msk [vmem:[#allocation2 + $0x110] sm:$0xff] %vm603_vm6, %v2919_v49  ;;  %608 = vst.msk [vmem:[#allocation2 + $0x118] sm:$0xff] %vm603_vm6, %v2919_v49 }
  0x55   : > { %2504 = vmatmul.mubr.msk.bf16.gmra.mrb[12].mxu0 %vm361_vm0, %v337_v26 }
  0x56   : > { %2507 = vmatprep.mubr.msk.bf16.mxu0 %vm361_vm0, %v338_v27 }
  0x5d   : > { %2508 = vmatmul.mubr.msk.bf16.gmra.mrb[16].mxu0 %vm361_vm0, %v339_v32 }
  0x5e   : > { %2511 = vmatprep.mubr.msk.bf16.mxu0 %vm361_vm0, %v340_v33 }
  0x65   : > { %2512 = vmatmul.mubr.msk.bf16.gmra.mrb[20].mxu0 %vm361_vm0, %v341_v38 }
  0x66   : > { %2515 = vmatprep.mubr.msk.bf16.mxu0 %vm361_vm0, %v342_v39 }
  0x6d   : > { %2516 = vmatmul.mubr.msk.bf16.gmra.mrb[24].mxu0 %vm361_vm0, %v343_v44 }
  0x6e   : > { %2519 = vmatprep.mubr.msk.bf16.mxu0 %vm361_vm0, %v344_v45 }
  0x75   : > { %2520 = vmatmul.mubr.msk.bf16.gmra.mrb[28].mxu0 %vm361_vm0, %v345_v48 }
 0x110   : > { %v2493_v51 = vpop.f32.mrb[0].mxu0 }
 0x111   : > { %v453_v52 = vadd.f32 %v2493_v51, %v3198_v50  ;;  %v444_v53 = vpop.f32.mrb[1].mxu0 }
 0x112   : > { %v445_v54 = vadd.f32 %v3198_v50, %v444_v53  ;;  %v2494_v55 = vpop.f32.mrb[2].mxu0 }
 0x113   : > { %v573_v56 = vmax.f32 %v453_v52, 0.0  ;;  %v456_v57 = vadd.f32 %v2494_v55, %v3198_v50  ;;  %v447_v58 = vpop.f32.mrb[3].mxu0 }
 0x114   : > { %v571_v59 = vmax.f32 %v445_v54, 0.0  ;;  %v448_v60 = vadd.f32 %v3198_v50, %v447_v58 }
 0x115   : > { %648 = vst.msk [vmem:[#allocation2 + $0x21] sm:$0xff] %vm644_vm3, %v573_v56  ;;  %v574_v61 = vmax.f32 %v456_v57, 0.0  ;;  %714 = vrot.lane.b32.xlu0 %v573_v56, %s2920_s29 }
 0x116   : > { %645 = vst.msk [vmem:[#allocation2 + $0x11] sm:$0xff] %vm644_vm3, %v571_v59  ;;  %v572_v62 = vmax.f32 %v448_v60, 0.0 }
 0x117   : > { %649 = vst.msk [vmem:[#allocation2 + $0x29] sm:$0x7f] %vm646_vm4, %v574_v61  ;;  %716 = vrot.lane.b32.xlu1 %v574_v61, %s2920_s29 }
 0x118   : > { %647 = vst.msk [vmem:[#allocation2 + $0x19] sm:$0x7f] %vm646_vm4, %v572_v62  ;;  %v2497_v63 = vpop.f32.mrb[4].mxu0 }
 0x119   : > { %v469_v0 = vadd.f32 %v2497_v63, %v3198_v50  ;;  %843 = vrot.lane.b32.xlu0 %v573_v56, %s2921_s19  ;;  %v460_v1 = vpop.f32.mrb[5].mxu0 }
 0x11a   : > { %v461_v2 = vadd.f32 %v3198_v50, %v460_v1  ;;  %v2498_v3 = vpop.f32.mrb[6].mxu0 }
 0x11b   : > { %v3213_v4 = vmax.f32 %v469_v0, 0.0  ;;  %v472_v5 = vadd.f32 %v2498_v3, %v3198_v50  ;;  %845 = vrot.lane.b32.xlu1 %v574_v61, %s2921_s19  ;;  %v463_v6 = vpop.f32.mrb[7].mxu0 }
 0x11c   : > { %v575_v8 = vmax.f32 %v461_v2, 0.0  ;;  %v464_v9 = vadd.f32 %v3198_v50, %v463_v6 }
 0x11d   : > { %652 = vst.msk [vmem:[#allocation2 + $0x41] sm:$0xff] %vm644_vm3, %v3213_v4  ;;  %v3223_v10 = vmax.f32 %v472_v5, 0.0  ;;  %710 = vrot.lane.b32.xlu0 %v571_v59, %s2920_s29 }
 0x11e   : > { %650 = vst.msk [vmem:[#allocation2 + $0x31] sm:$0xff] %vm644_vm3, %v575_v8  ;;  %v576_v12 = vmax.f32 %v464_v9, 0.0 }
 0x11f   : > { %653 = vst.msk [vmem:[#allocation2 + $0x49] sm:$0x7f] %vm646_vm4, %v3223_v10  ;;  %712 = vrot.lane.b32.xlu1 %v572_v62, %s2920_s29 }
 0x120   : > { %651 = vst.msk [vmem:[#allocation2 + $0x39] sm:$0x7f] %vm646_vm4, %v576_v12  ;;  %v2501_v13 = vpop.f32.mrb[8].mxu0 }
 0x121   : > { %v485_v14 = vadd.f32 %v2501_v13, %v3198_v50  ;;  %v476_v15 = vpop.f32.mrb[9].mxu0  ;;  %839 = vrot.lane.b32.xlu0 %v571_v59, %s2921_s19 }
 0x122   : > { %v477_v16 = vadd.f32 %v3198_v50, %v476_v15  ;;  %v2502_v17 = vpop.f32.mrb[10].mxu0 }
 0x123   : > { %v3245_v18 = vmax.f32 %v485_v14, 0.0  ;;  %v488_v19 = vadd.f32 %v2502_v17, %v3198_v50  ;;  %v479_v20 = vpop.f32.mrb[11].mxu0  ;;  %841 = vrot.lane.b32.xlu1 %v572_v62, %s2921_s19 }
 0x124   : > { %v3249_v21 = vmax.f32 %v477_v16, 0.0  ;;  %v480_v22 = vadd.f32 %v3198_v50, %v479_v20 }
 0x125   : > { %656 = vst.msk [vmem:[#allocation2 + $0x61] sm:$0xff] %vm644_vm3, %v3245_v18  ;;  %v3254_v23 = vmax.f32 %v488_v19, 0.0  ;;  %718 = vrot.lane.b32.xlu0 %v575_v8, %s2920_s29 }
 0x126   : > { %654 = vst.msk [vmem:[#allocation2 + $0x51] sm:$0xff] %vm644_vm3, %v3249_v21  ;;  %v3259_v24 = vmax.f32 %v480_v22, 0.0 }
 0x127   : > { %657 = vst.msk [vmem:[#allocation2 + $0x69] sm:$0x7f] %vm646_vm4, %v3254_v23  ;;  %720 = vrot.lane.b32.xlu1 %v576_v12, %s2920_s29 }
 0x128   : > { %655 = vst.msk [vmem:[#allocation2 + $0x59] sm:$0x7f] %vm646_vm4, %v3259_v24  ;;  %v2505_v25 = vpop.f32.mrb[12].mxu0 }
 0x129   : > { %v501_v26 = vadd.f32 %v2505_v25, %v3198_v50  ;;  %v492_v27 = vpop.f32.mrb[13].mxu0  ;;  %847 = vrot.lane.b32.xlu0 %v575_v8, %s2921_s19 }
 0x12a   : > { %v493_v28 = vadd.f32 %v3198_v50, %v492_v27  ;;  %v2506_v29 = vpop.f32.mrb[14].mxu0 }
 0x12b   : > { %v3269_v30 = vmax.f32 %v501_v26, 0.0  ;;  %v504_v31 = vadd.f32 %v2506_v29, %v3198_v50  ;;  %v495_v32 = vpop.f32.mrb[15].mxu0  ;;  %849 = vrot.lane.b32.xlu1 %v576_v12, %s2921_s19 }
 0x12c   : > { %v3273_v33 = vmax.f32 %v493_v28, 0.0  ;;  %v496_v34 = vadd.f32 %v3198_v50, %v495_v32 }
 0x12d   : > { %660 = vst.msk [vmem:[#allocation2 + $0x81] sm:$0xff] %vm644_vm3, %v3269_v30  ;;  %v3278_v35 = vmax.f32 %v504_v31, 0.0 }
 0x12e   : > { %658 = vst.msk [vmem:[#allocation2 + $0x71] sm:$0xff] %vm644_vm3, %v3273_v33  ;;  %v3282_v36 = vmax.f32 %v496_v34, 0.0 }
 0x12f   : > { %661 = vst.msk [vmem:[#allocation2 + $0x89] sm:$0x7f] %vm646_vm4, %v3278_v35 }
 0x130   : > { %659 = vst.msk [vmem:[#allocation2 + $0x79] sm:$0x7f] %vm646_vm4, %v3282_v36  ;;  %v2509_v37 = vpop.f32.mrb[16].mxu0 }
 0x131   : > { %v517_v38 = vadd.f32 %v2509_v37, %v3198_v50  ;;  %v508_v39 = vpop.f32.mrb[17].mxu0 }
 0x132   : > { %v509_v40 = vadd.f32 %v3198_v50, %v508_v39  ;;  %v2510_v41 = vpop.f32.mrb[18].mxu0 }
 0x133   : > { %v589_v42 = vmax.f32 %v517_v38, 0.0  ;;  %v520_v43 = vadd.f32 %v2510_v41, %v3198_v50  ;;  %v511_v44 = vpop.f32.mrb[19].mxu0 }
 0x134   : > { %v587_v45 = vmax.f32 %v509_v40, 0.0  ;;  %v512_v46 = vadd.f32 %v3198_v50, %v511_v44 }
 0x135   : > { %664 = vst.msk [vmem:[#allocation2 + $0xa1] sm:$0xff] %vm644_vm3, %v589_v42  ;;  %v590_v47 = vmax.f32 %v520_v43, 0.0  ;;  %746 = vrot.lane.b32.xlu1 %v589_v42, %s2920_s29  ;;  %875 = vrot.lane.b32.xlu0 %v589_v42, %s2921_s19 }
 0x136   : > { %662 = vst.msk [vmem:[#allocation2 + $0x91] sm:$0xff] %vm644_vm3, %v587_v45  ;;  %v588_v48 = vmax.f32 %v512_v46, 0.0 }
 0x137   : > { %665 = vst.msk [vmem:[#allocation2 + $0xa9] sm:$0x7f] %vm646_vm4, %v590_v47 }
 0x138   : > { %663 = vst.msk [vmem:[#allocation2 + $0x99] sm:$0x7f] %vm646_vm4, %v588_v48  ;;  %v2513_v49 = vpop.f32.mrb[20].mxu0 }
 0x139   : > { %748 = vrot.lane.b32.xlu1 %v590_v47, %s2920_s29  ;;  %742 = vrot.lane.b32.xlu0 %v587_v45, %s2920_s29  ;;  %v533_v51 = vadd.f32 %v2513_v49, %v3198_v50  ;;  %v524_v52 = vpop.f32.mrb[21].mxu0 }
 0x13a   : > { %v525_v53 = vadd.f32 %v3198_v50, %v524_v52  ;;  %v2514_v54 = vpop.f32.mrb[22].mxu0 }
 0x13b   : > { %v593_v55 = vmax.f32 %v533_v51, 0.0  ;;  %v536_v56 = vadd.f32 %v2514_v54, %v3198_v50  ;;  %v527_v57 = vpop.f32.mrb[23].mxu0 }
 0x13c   : > { %v591_v58 = vmax.f32 %v525_v53, 0.0  ;;  %v528_v59 = vadd.f32 %v3198_v50, %v527_v57 }
 0x13d   : > { %668 = vst.msk [vmem:[#allocation2 + $0xc1] sm:$0xff] %vm644_vm3, %v593_v55  ;;  %v594_v60 = vmax.f32 %v536_v56, 0.0  ;;  %877 = vrot.lane.b32.xlu1 %v590_v47, %s2921_s19  ;;  %871 = vrot.lane.b32.xlu0 %v587_v45, %s2921_s19 }
 0x13e   : > { %666 = vst.msk [vmem:[#allocation2 + $0xb1] sm:$0xff] %vm644_vm3, %v591_v58  ;;  %v592_v61 = vmax.f32 %v528_v59, 0.0 }
 0x13f   : > { %669 = vst.msk [vmem:[#allocation2 + $0xc9] sm:$0x7f] %vm646_vm4, %v594_v60 }
 0x140   : > { %667 = vst.msk [vmem:[#allocation2 + $0xb9] sm:$0x7f] %vm646_vm4, %v592_v61  ;;  %v2517_v62 = vpop.f32.mrb[24].mxu0 }
 0x141   : > { %873 = vrot.lane.b32.xlu1 %v588_v48, %s2921_s19  ;;  %744 = vrot.lane.b32.xlu0 %v588_v48, %s2920_s29  ;;  %v549_v63 = vadd.f32 %v2517_v62, %v3198_v50  ;;  %v540_v0 = vpop.f32.mrb[25].mxu0 }
 0x142   : > { %v541_v1 = vadd.f32 %v3198_v50, %v540_v0  ;;  %v2518_v2 = vpop.f32.mrb[26].mxu0 }
 0x143   : > { %v597_v3 = vmax.f32 %v549_v63, 0.0  ;;  %v552_v5 = vadd.f32 %v2518_v2, %v3198_v50  ;;  %v543_v6 = vpop.f32.mrb[27].mxu0  ;;  %v3444_v63 = vld [vmem:[%s3835_s3 + $0x10] sm:$0x3f]  }
 0x144   : > { %v595_v7 = vmax.f32 %v541_v1, 0.0  ;;  %v544_v8 = vadd.f32 %v3198_v50, %v543_v6 }
 0x145   : > { %756 = vrot.lane.b32.xlu1 %v594_v60, %s2920_s29  ;;  %754 = vrot.lane.b32.xlu0 %v593_v55, %s2920_s29  ;;  %672 = vst.msk [vmem:[#allocation2 + $0xe1] sm:$0xff] %vm644_vm3, %v597_v3  ;;  %v598_v9 = vmax.f32 %v552_v5, 0.0 }
 0x146   : > { %670 = vst.msk [vmem:[#allocation2 + $0xd1] sm:$0xff] %vm644_vm3, %v595_v7  ;;  %v596_v11 = vmax.f32 %v544_v8, 0.0 }
 0x147   : > { %673 = vst.msk [vmem:[#allocation2 + $0xe9] sm:$0x7f] %vm646_vm4, %v598_v9 }
 0x148   : > { %671 = vst.msk [vmem:[#allocation2 + $0xd9] sm:$0x7f] %vm646_vm4, %v596_v11  ;;  %v2521_v12 = vpop.f32.mrb[28].mxu0 }
 0x149   : > { %885 = vrot.lane.b32.xlu1 %v594_v60, %s2921_s19  ;;  %883 = vrot.lane.b32.xlu0 %v593_v55, %s2921_s19  ;;  %v565_v13 = vadd.f32 %v2521_v12, %v3198_v50  ;;  %v556_v14 = vpop.f32.mrb[29].mxu0 }
 0x14a   : > { %v557_v15 = vadd.f32 %v3198_v50, %v556_v14  ;;  %v2522_v16 = vpop.f32.mrb[30].mxu0 }
 0x14b   : > { %v601_v17 = vmax.f32 %v565_v13, 0.0  ;;  %v568_v19 = vadd.f32 %v2522_v16, %v3198_v50  ;;  %v559_v20 = vpop.f32.mrb[31].mxu0 }
 0x14c   : > { %v599_v22 = vmax.f32 %v557_v15, 0.0  ;;  %v560_v25 = vadd.f32 %v3198_v50, %v559_v20  ;;  %v3339_v50 = vld [vmem:[%s3835_s3] sm:$0x3f]  }
 0x14d   : > { %752 = vrot.lane.b32.xlu1 %v592_v61, %s2920_s29  ;;  %750 = vrot.lane.b32.xlu0 %v591_v58, %s2920_s29  ;;  %676 = vst.msk [vmem:[#allocation2 + $0x101] sm:$0xff] %vm644_vm3, %v601_v17  ;;  %v602_v26 = vmax.f32 %v568_v19, 0.0  ;;  %v1342_v62 = vsel %vm1123_vm5, %v3339_v50, 0 }
 0x14e   : > { %674 = vst.msk [vmem:[#allocation2 + $0xf1] sm:$0xff] %vm644_vm3, %v599_v22  ;;  %v600_v27 = vmax.f32 %v560_v25, 0.0  ;;  %2727 = vmatprep.subr.msk.bf16.mxu1 %vm1123_vm5, %v3339_v50 }
 0x14f   : > { %677 = vst.msk [vmem:[#allocation2 + $0x109] sm:$0x7f] %vm646_vm4, %v602_v26 }
 0x150   : > { %675 = vst.msk [vmem:[#allocation2 + $0xf9] sm:$0x7f] %vm646_vm4, %v600_v27 }
 0x151   : > { %881 = vrot.lane.b32.xlu1 %v592_v61, %s2921_s19  ;;  %879 = vrot.lane.b32.xlu0 %v591_v58, %s2921_s19 }
 0x155   : > { %764 = vrot.lane.b32.xlu1 %v598_v9, %s2920_s29  ;;  %762 = vrot.lane.b32.xlu0 %v597_v3, %s2920_s29 }
 0x159   : > { %893 = vrot.lane.b32.xlu1 %v598_v9, %s2921_s19  ;;  %891 = vrot.lane.b32.xlu0 %v597_v3, %s2921_s19 }
 0x15d   : > { %760 = vrot.lane.b32.xlu1 %v596_v11, %s2920_s29  ;;  %758 = vrot.lane.b32.xlu0 %v595_v7, %s2920_s29 }
 0x161   : > { %889 = vrot.lane.b32.xlu1 %v596_v11, %s2921_s19  ;;  %887 = vrot.lane.b32.xlu0 %v595_v7, %s2921_s19 }
 0x165   : > { %772 = vrot.lane.b32.xlu1 %v602_v26, %s2920_s29  ;;  %770 = vrot.lane.b32.xlu0 %v601_v17, %s2920_s29 }
 0x169   : > { %901 = vrot.lane.b32.xlu1 %v602_v26, %s2921_s19  ;;  %899 = vrot.lane.b32.xlu0 %v601_v17, %s2921_s19 }
 0x16d   : > { %768 = vrot.lane.b32.xlu1 %v600_v27, %s2920_s29  ;;  %766 = vrot.lane.b32.xlu0 %v599_v22, %s2920_s29 }
 0x171   : > { %897 = vrot.lane.b32.xlu1 %v600_v27, %s2921_s19  ;;  %895 = vrot.lane.b32.xlu0 %v599_v22, %s2921_s19 }
 0x175   : > { %724 = vrot.lane.b32.xlu1 %v3223_v10, %s2920_s29  ;;  %722 = vrot.lane.b32.xlu0 %v3213_v4, %s2920_s29 }
 0x179   : > { %728 = vrot.lane.b32.xlu1 %v3259_v24, %s2920_s29  ;;  %726 = vrot.lane.b32.xlu0 %v3249_v21, %s2920_s29 }
 0x17d   : > { %853 = vrot.lane.b32.xlu1 %v3223_v10, %s2921_s19  ;;  %851 = vrot.lane.b32.xlu0 %v3213_v4, %s2921_s19 }
 0x181   : > { %857 = vrot.lane.b32.xlu1 %v3259_v24, %s2921_s19  ;;  %855 = vrot.lane.b32.xlu0 %v3249_v21, %s2921_s19 }
 0x185   : > { %732 = vrot.lane.b32.xlu1 %v3254_v23, %s2920_s29  ;;  %730 = vrot.lane.b32.xlu0 %v3245_v18, %s2920_s29 }
 0x187   : > { %v715_v28 = vpop.permute.xlu0 %714 }
 0x188   : > { %809 = vst.msk [vmem:[#allocation2 + $0x20] sm:$0xff] %vm806_vm7, %v715_v28 }
 0x189   : > { %v717_v10 = vpop.permute.xlu1 %716  ;;  %736 = vrot.lane.b32.xlu1 %v3282_v36, %s2920_s29  ;;  %734 = vrot.lane.b32.xlu0 %v3273_v33, %s2920_s29 }
 0x18a   : > { %810 = vst.msk [vmem:[#allocation2 + $0x28] sm:$0xff] %vm806_vm7, %v717_v10 }
 0x18b   : > { %v844_v4 = vpop.permute.xlu0 %843 }
 0x18c   : > { %939 = vst.msk [vmem:[#allocation2 + $0x1f] sm:$0xfe] %vm935_vm8, %v844_v4 }
 0x18d   : > { %v846_v21 = vpop.permute.xlu1 %845  ;;  %861 = vrot.lane.b32.xlu1 %v3254_v23, %s2921_s19  ;;  %859 = vrot.lane.b32.xlu0 %v3245_v18, %s2921_s19 }
 0x18e   : > { %940 = vst.msk [vmem:[#allocation2 + $0x27] sm:$0xff] %vm937_vm9, %v846_v21 }
 0x18f   : > { %v711_v24 = vpop.permute.xlu0 %710 }
 0x190   : > { %807 = vst.msk [vmem:[#allocation2 + $0x10] sm:$0xff] %vm806_vm7, %v711_v24 }
 0x191   : > { %865 = vrot.lane.b32.xlu1 %v3282_v36, %s2921_s19  ;;  %v713_v29 = vpop.permute.xlu1 %712  ;;  %863 = vrot.lane.b32.xlu0 %v3273_v33, %s2921_s19 }
 0x192   : > { %808 = vst.msk [vmem:[#allocation2 + $0x18] sm:$0xff] %vm806_vm7, %v713_v29 }
 0x193   : > { %v840_v31 = vpop.permute.xlu0 %839 }
 0x194   : > { %936 = vst.msk [vmem:[#allocation2 + $0xf] sm:$0xfe] %vm935_vm8, %v840_v31 }
 0x195   : > { %740 = vrot.lane.b32.xlu1 %v3278_v35, %s2920_s29  ;;  %v842_v18 = vpop.permute.xlu1 %841  ;;  %738 = vrot.lane.b32.xlu0 %v3269_v30, %s2920_s29  ;;  %v1021_v34 = vld [vmem:[#allocation2 + $0x20] sm:$0xff]  ;;  %v1022_v36 = vld [vmem:[#allocation2 + $0x28] sm:$0xff]  ;;  %s2854_s29 = scalar_lea.vmem %s2853_s23, 8192 }
 0x196   : > { %938 = vst.msk [vmem:[#allocation2 + $0x17] sm:$0xff] %vm937_vm9, %v842_v18  ;;  %v3413_v41 = vpack.c.bf16 %v1022_v36, %v1021_v34  ;;  %v969_v34 = vld [vmem:[#allocation2] sm:$0xff]  ;;  %v970_v36 = vld [vmem:[#allocation2 + $0x8] sm:$0xff] }
 0x197   : > { %v719_v23 = vpop.permute.xlu0 %718 }
 0x198   : > { %811 = vst.msk [vmem:[#allocation2 + $0x30] sm:$0xff] %vm806_vm7, %v719_v23 }
 0x199   : > { %869 = vrot.lane.b32.xlu1 %v3278_v35, %s2921_s19  ;;  %v721_v32 = vpop.permute.xlu1 %720  ;;  %867 = vrot.lane.b32.xlu0 %v3269_v30, %s2921_s19 }
 0x19a   : > { %812 = vst.msk [vmem:[#allocation2 + $0x38] sm:$0xff] %vm806_vm7, %v721_v32 }
 0x19b   : > { %v848_v33 = vpop.permute.xlu0 %847 }
 0x19c   : > { %941 = vst.msk [vmem:[#allocation2 + $0x2f] sm:$0xfe] %vm935_vm8, %v848_v33 }
 0x19d   : > { %v850_v37 = vpop.permute.xlu1 %849  ;;  %v1019_v38 = vld [vmem:[#allocation2 + $0x10] sm:$0xff]  ;;  %v1020_v39 = vld [vmem:[#allocation2 + $0x18] sm:$0xff] }
 0x19e   : > { %942 = vst.msk [vmem:[#allocation2 + $0x37] sm:$0xff] %vm937_vm9, %v850_v37  ;;  %v3411_v40 = vpack.c.bf16 %v1020_v39, %v1019_v38 }
 0x1a0   : > { %2525 = vmatprep.mubr.msk.bf16.mxu0 %vm603_vm6, %v3411_v40 }
 0x1a1   : > { %2526 = vmatmul.mubr.msk.bf16.vlgmr.msra.gmra.mrb[32].mxu0 %vm603_vm6, %v3413_v41 }
 0x1a5   : > { %v1023_v30 = vld [vmem:[#allocation2 + $0x30] sm:$0xff]  ;;  %v1024_v35 = vld [vmem:[#allocation2 + $0x38] sm:$0xff] }
 0x1a6   : > { %v3419_v42 = vpack.c.bf16 %v1024_v35, %v1023_v30 }
 0x1a7   : > { %v747_v43 = vpop.permute.xlu1 %746  ;;  %v876_v44 = vpop.permute.xlu0 %875 }
 0x1a8   : > { %825 = vst.msk [vmem:[#allocation2 + $0xa0] sm:$0xff] %vm806_vm7, %v747_v43  ;;  %2529 = vmatprep.mubr.msk.bf16.mxu0 %vm603_vm6, %v3419_v42 }
 0x1a9   : > { %955 = vst.msk [vmem:[#allocation2 + $0x9f] sm:$0xfe] %vm935_vm8, %v876_v44 }
 0x1ab   : > { %v749_v45 = vpop.permute.xlu1 %748  ;;  %v743_v46 = vpop.permute.xlu0 %742 }
 0x1ac   : > { %826 = vst.msk [vmem:[#allocation2 + $0xa8] sm:$0xff] %vm806_vm7, %v749_v45  ;;  %823 = vst.msk [vmem:[#allocation2 + $0x90] sm:$0xff] %vm806_vm7, %v743_v46  ;;  %v1001_v45 = vpack.c.bf16 %v970_v36, %v969_v34  ;;  %v3589_v36 = vld [vmem:[%s3836_s4] ss:$0 sm:$0xff] }
 0x1af   : > { %v878_v47 = vpop.permute.xlu1 %877  ;;  %v872_v48 = vpop.permute.xlu0 %871 }
 0x1b0   : > { %956 = vst.msk [vmem:[#allocation2 + $0xa7] sm:$0xff] %vm937_vm9, %v878_v47 }
 0x1b1   : > { %953 = vst.msk [vmem:[#allocation2 + $0x8f] sm:$0xfe] %vm935_vm8, %v872_v48 }
 0x1b3   : > { %v874_v49 = vpop.permute.xlu1 %873  ;;  %v745_v51 = vpop.permute.xlu0 %744 }
 0x1b4   : > { %824 = vst.msk [vmem:[#allocation2 + $0x98] sm:$0xff] %vm806_vm7, %v745_v51 }
 0x1b5   : > { %954 = vst.msk [vmem:[#allocation2 + $0x97] sm:$0xff] %vm937_vm9, %v874_v49 }
 0x1b7   : > { %v757_v52 = vpop.permute.xlu1 %756  ;;  %v755_v53 = vpop.permute.xlu0 %754  ;;  %v1037_v56 = vld [vmem:[#allocation2 + $0xa0] sm:$0xff]  ;;  %v1038_v57 = vld [vmem:[#allocation2 + $0xa8] sm:$0xff] }
 0x1b8   : > { %830 = vst.msk [vmem:[#allocation2 + $0xc8] sm:$0xff] %vm806_vm7, %v757_v52  ;;  %829 = vst.msk [vmem:[#allocation2 + $0xc0] sm:$0xff] %vm806_vm7, %v755_v53  ;;  %v3437_v61 = vpack.c.bf16 %v1038_v57, %v1037_v56  ;;  %v1611_v52 = vsel %vm1123_vm5, %v3444_v63, 0 }
 0x1bb   : > { %v886_v54 = vpop.permute.xlu1 %885  ;;  %v884_v55 = vpop.permute.xlu0 %883 }
 0x1bc   : > { %960 = vst.msk [vmem:[#allocation2 + $0xc7] sm:$0xff] %vm937_vm9, %v886_v54  ;;  %v1035_v58 = vld [vmem:[#allocation2 + $0x90] sm:$0xff]  ;;  %v1036_v59 = vld [vmem:[#allocation2 + $0x98] sm:$0xff] }
 0x1bd   : > { %959 = vst.msk [vmem:[#allocation2 + $0xbf] sm:$0xfe] %vm935_vm8, %v884_v55  ;;  %v3435_v60 = vpack.c.bf16 %v1036_v59, %v1035_v58 }
 0x1bf   : > { %v753_v0 = vpop.permute.xlu1 %752  ;;  %2541 = vmatprep.mubr.msk.bf16.mxu1 %vm603_vm6, %v3435_v60  ;;  %v751_v1 = vpop.permute.xlu0 %750 }
 0x1c0   : > { %828 = vst.msk [vmem:[#allocation2 + $0xb8] sm:$0xff] %vm806_vm7, %v753_v0  ;;  %827 = vst.msk [vmem:[#allocation2 + $0xb0] sm:$0xff] %vm806_vm7, %v751_v1  ;;  %2542 = vmatmul.mubr.msk.bf16.vlgmr.msra.gmra.mrb[0].mxu1 %vm603_vm6, %v3437_v61 }
 0x1c1   : > { %2558 = vmatpush3.bf16.msra.mxu1 %v1342_v62 }
 0x1c2   : > { %2728 = vmatprep.subr.msk.bf16.mxu1 %vm1123_vm5, %v3444_v63 }
 0x1c3   : > { %v882_v2 = vpop.permute.xlu1 %881  ;;  %v880_v3 = vpop.permute.xlu0 %879  ;;  %v1042_v8 = vld [vmem:[#allocation2 + $0xc8] sm:$0xff] }
 0x1c4   : > { %958 = vst.msk [vmem:[#allocation2 + $0xb7] sm:$0xff] %vm937_vm9, %v882_v2  ;;  %v1041_v7 = vld [vmem:[#allocation2 + $0xc0] sm:$0xff] }
 0x1c5   : > { %957 = vst.msk [vmem:[#allocation2 + $0xaf] sm:$0xfe] %vm935_vm8, %v880_v3  ;;  %v3462_v15 = vpack.c.bf16 %v1042_v8, %v1041_v7 }
 0x1c7   : > { %v765_v5 = vpop.permute.xlu1 %764  ;;  %v763_v6 = vpop.permute.xlu0 %762 }
 0x1c8   : > { %834 = vst.msk [vmem:[#allocation2 + $0xe8] sm:$0xff] %vm806_vm7, %v765_v5  ;;  %833 = vst.msk [vmem:[#allocation2 + $0xe0] sm:$0xff] %vm806_vm7, %v763_v6 }
 0x1cb   : > { %v894_v9 = vpop.permute.xlu1 %893  ;;  %v892_v11 = vpop.permute.xlu0 %891  ;;  %v1040_v13 = vld [vmem:[#allocation2 + $0xb8] sm:$0xff] }
 0x1cc   : > { %v1039_v12 = vld [vmem:[#allocation2 + $0xb0] sm:$0xff]  ;;  %964 = vst.msk [vmem:[#allocation2 + $0xe7] sm:$0xff] %vm937_vm9, %v894_v9 }
 0x1cd   : > { %963 = vst.msk [vmem:[#allocation2 + $0xdf] sm:$0xfe] %vm935_vm8, %v892_v11  ;;  %v3460_v14 = vpack.c.bf16 %v1040_v13, %v1039_v12 }
 0x1cf   : > { %2545 = vmatprep.mubr.msk.bf16.mxu1 %vm603_vm6, %v3460_v14  ;;  %v761_v16 = vpop.permute.xlu1 %760  ;;  %v759_v17 = vpop.permute.xlu0 %758 }
 0x1d0   : > { %2546 = vmatmul.mubr.msk.bf16.gmra.mrb[4].mxu1 %vm603_vm6, %v3462_v15  ;;  %832 = vst.msk [vmem:[#allocation2 + $0xd8] sm:$0xff] %vm806_vm7, %v761_v16  ;;  %831 = vst.msk [vmem:[#allocation2 + $0xd0] sm:$0xff] %vm806_vm7, %v759_v17 }
 0x1d3   : > { %v890_v19 = vpop.permute.xlu1 %889  ;;  %v888_v20 = vpop.permute.xlu0 %887  ;;  %v1046_v27 = vld [vmem:[#allocation2 + $0xe8] sm:$0xff] }
 0x1d4   : > { %962 = vst.msk [vmem:[#allocation2 + $0xd7] sm:$0xff] %vm937_vm9, %v890_v19  ;;  %v1045_v26 = vld [vmem:[#allocation2 + $0xe0] sm:$0xff] }
 0x1d5   : > { %961 = vst.msk [vmem:[#allocation2 + $0xcf] sm:$0xfe] %vm935_vm8, %v888_v20  ;;  %v3478_v24 = vpack.c.bf16 %v1046_v27, %v1045_v26 }
 0x1d7   : > { %v773_v22 = vpop.permute.xlu1 %772  ;;  %v771_v25 = vpop.permute.xlu0 %770 }
 0x1d8   : > { %838 = vst.msk [vmem:[#allocation2 + $0x108] sm:$0xff] %vm806_vm7, %v773_v22  ;;  %837 = vst.msk [vmem:[#allocation2 + $0x100] sm:$0xff] %vm806_vm7, %v771_v25 }
 0x1db   : > { %v902_v50 = vpop.permute.xlu1 %901  ;;  %v900_v28 = vpop.permute.xlu0 %899  ;;  %v1044_v4 = vld [vmem:[#allocation2 + $0xd8] sm:$0xff] }
 0x1dc   : > { %v1043_v10 = vld [vmem:[#allocation2 + $0xd0] sm:$0xff]  ;;  %968 = vst.msk [vmem:[#allocation2 + $0x107] sm:$0xff] %vm937_vm9, %v902_v50 }
 0x1dd   : > { %967 = vst.msk [vmem:[#allocation2 + $0xff] sm:$0xfe] %vm935_vm8, %v900_v28  ;;  %v3476_v21 = vpack.c.bf16 %v1044_v4, %v1043_v10 }
 0x1df   : > { %2549 = vmatprep.mubr.msk.bf16.mxu1 %vm603_vm6, %v3476_v21  ;;  %v769_v29 = vpop.permute.xlu1 %768  ;;  %v767_v31 = vpop.permute.xlu0 %766 }
 0x1e0   : > { %2550 = vmatmul.mubr.msk.bf16.gmra.mrb[8].mxu1 %vm603_vm6, %v3478_v24  ;;  %836 = vst.msk [vmem:[#allocation2 + $0xf8] sm:$0xff] %vm806_vm7, %v769_v29  ;;  %835 = vst.msk [vmem:[#allocation2 + $0xf0] sm:$0xff] %vm806_vm7, %v767_v31 }
 0x1e3   : > { %v898_v18 = vpop.permute.xlu1 %897  ;;  %v896_v23 = vpop.permute.xlu0 %895  ;;  %v1050_v38 = vld [vmem:[#allocation2 + $0x108] sm:$0xff] }
 0x1e4   : > { %966 = vst.msk [vmem:[#allocation2 + $0xf7] sm:$0xff] %vm937_vm9, %v898_v18  ;;  %v1049_v37 = vld [vmem:[#allocation2 + $0x100] sm:$0xff] }
 0x1e5   : > { %965 = vst.msk [vmem:[#allocation2 + $0xef] sm:$0xfe] %vm935_vm8, %v896_v23  ;;  %v3494_v46 = vpack.c.bf16 %v1050_v38, %v1049_v37 }
 0x1e7   : > { %v725_v32 = vpop.permute.xlu1 %724  ;;  %v723_v33 = vpop.permute.xlu0 %722 }
 0x1e8   : > { %814 = vst.msk [vmem:[#allocation2 + $0x48] sm:$0xff] %vm806_vm7, %v725_v32  ;;  %813 = vst.msk [vmem:[#allocation2 + $0x40] sm:$0xff] %vm806_vm7, %v723_v33 }
 0x1eb   : > { %v729_v39 = vpop.permute.xlu1 %728  ;;  %v727_v30 = vpop.permute.xlu0 %726  ;;  %v1048_v43 = vld [vmem:[#allocation2 + $0xf8] sm:$0xff] }
 0x1ec   : > { %v1047_v35 = vld [vmem:[#allocation2 + $0xf0] sm:$0xff]  ;;  %816 = vst.msk [vmem:[#allocation2 + $0x58] sm:$0xff] %vm806_vm7, %v729_v39  ;;  %815 = vst.msk [vmem:[#allocation2 + $0x50] sm:$0xff] %vm806_vm7, %v727_v30 }
 0x1ed   : > { %v3492_v44 = vpack.c.bf16 %v1048_v43, %v1047_v35 }
 0x1ef   : > { %2553 = vmatprep.mubr.msk.bf16.mxu1 %vm603_vm6, %v3492_v44  ;;  %v854_v47 = vpop.permute.xlu1 %853  ;;  %v852_v48 = vpop.permute.xlu0 %851 }
 0x1f0   : > { %2554 = vmatmul.mubr.msk.bf16.gmra.mrb[12].mxu1 %vm603_vm6, %v3494_v46  ;;  %944 = vst.msk [vmem:[#allocation2 + $0x47] sm:$0xff] %vm937_vm9, %v854_v47 }
 0x1f1   : > { %943 = vst.msk [vmem:[#allocation2 + $0x3f] sm:$0xfe] %vm935_vm8, %v852_v48  ;;  %2559 = vmatprep.mubr.msk.bf16.mxu1 %vm603_vm6, %v1001_v45 }
 0x1f3   : > { %v858_v49 = vpop.permute.xlu1 %857  ;;  %v856_v51 = vpop.permute.xlu0 %855 }
 0x1f4   : > { %946 = vst.msk [vmem:[#allocation2 + $0x57] sm:$0xff] %vm937_vm9, %v858_v49 }
 0x1f5   : > { %945 = vst.msk [vmem:[#allocation2 + $0x4f] sm:$0xfe] %vm935_vm8, %v856_v51 }
 0x1f7   : > { %v733_v53 = vpop.permute.xlu1 %732  ;;  %v731_v54 = vpop.permute.xlu0 %730  ;;  %v1026_v56 = vld [vmem:[#allocation2 + $0x48] sm:$0xff] }
 0x1f8   : > { %2560 = vmatmul.mubr.msk.bf16.vlgmr.msra.gmra.mrb[16].mxu1 %vm603_vm6, %v3411_v40  ;;  %v1025_v55 = vld [vmem:[#allocation2 + $0x40] sm:$0xff]  ;;  %818 = vst.msk [vmem:[#allocation2 + $0x68] sm:$0xff] %vm806_vm7, %v733_v53  ;;  %817 = vst.msk [vmem:[#allocation2 + $0x60] sm:$0xff] %vm806_vm7, %v731_v54 }
 0x1f9   : > { %2592 = vmatpush3.bf16.msra.mxu1 %v1611_v52  ;;  %2563 = vmatprep.mubr.msk.bf16.mxu1 %vm603_vm6, %v3413_v41  ;;  %v1054_v57 = vpack.c.bf16 %v1026_v56, %v1025_v55 }
 0x1fb   : > { %2530 = vmatmul.mubr.msk.bf16.gmra.mrb[36].mxu0 %vm603_vm6, %v1054_v57  ;;  %v737_v58 = vpop.permute.xlu1 %736  ;;  %v735_v59 = vpop.permute.xlu0 %734  ;;  %v1028_v63 = vld [vmem:[#allocation2 + $0x58] sm:$0xff] }
 0x1fc   : > { %v1027_v62 = vld [vmem:[#allocation2 + $0x50] sm:$0xff]  ;;  %820 = vst.msk [vmem:[#allocation2 + $0x78] sm:$0xff] %vm806_vm7, %v737_v58  ;;  %819 = vst.msk [vmem:[#allocation2 + $0x70] sm:$0xff] %vm806_vm7, %v735_v59 }
 0x1fd   : > { %v1055_v40 = vpack.c.bf16 %v1028_v63, %v1027_v62 }
 0x1ff   : > { %2533 = vmatprep.mubr.msk.bf16.mxu0 %vm603_vm6, %v1055_v40  ;;  %v862_v0 = vpop.permute.xlu1 %861  ;;  %v860_v1 = vpop.permute.xlu0 %859 }
 0x200   : > { %2564 = vmatmul.mubr.msk.bf16.gmra.mrb[20].mxu1 %vm603_vm6, %v3419_v42  ;;  %948 = vst.msk [vmem:[#allocation2 + $0x67] sm:$0xff] %vm937_vm9, %v862_v0 }
 0x201   : > { %947 = vst.msk [vmem:[#allocation2 + $0x5f] sm:$0xfe] %vm935_vm8, %v860_v1  ;;  %2567 = vmatprep.mubr.msk.bf16.mxu1 %vm603_vm6, %v1054_v57 }
 0x203   : > { %v866_v2 = vpop.permute.xlu1 %865  ;;  %v864_v3 = vpop.permute.xlu0 %863 }
 0x204   : > { %950 = vst.msk [vmem:[#allocation2 + $0x77] sm:$0xff] %vm937_vm9, %v866_v2 }
 0x205   : > { %949 = vst.msk [vmem:[#allocation2 + $0x6f] sm:$0xfe] %vm935_vm8, %v864_v3 }
 0x207   : > { %v741_v5 = vpop.permute.xlu1 %740  ;;  %v739_v6 = vpop.permute.xlu0 %738  ;;  %v1030_v8 = vld [vmem:[#allocation2 + $0x68] sm:$0xff] }
 0x208   : > { %2568 = vmatmul.mubr.msk.bf16.gmra.mrb[24].mxu1 %vm603_vm6, %v1055_v40  ;;  %v1029_v7 = vld [vmem:[#allocation2 + $0x60] sm:$0xff]  ;;  %822 = vst.msk [vmem:[#allocation2 + $0x88] sm:$0xff] %vm806_vm7, %v741_v5  ;;  %821 = vst.msk [vmem:[#allocation2 + $0x80] sm:$0xff] %vm806_vm7, %v739_v6 }
 0x209   : > { %v1056_v9 = vpack.c.bf16 %v1030_v8, %v1029_v7 }
 0x20b   : > { %2534 = vmatmul.mubr.msk.bf16.gmra.mrb[40].mxu0 %vm603_vm6, %v1056_v9  ;;  %2571 = vmatprep.mubr.msk.bf16.mxu1 %vm603_vm6, %v1056_v9  ;;  %v870_v11 = vpop.permute.xlu1 %869  ;;  %v868_v12 = vpop.permute.xlu0 %867  ;;  %v1032_v16 = vld [vmem:[#allocation2 + $0x78] sm:$0xff] }
 0x20c   : > { %v1031_v13 = vld [vmem:[#allocation2 + $0x70] sm:$0xff]  ;;  %952 = vst.msk [vmem:[#allocation2 + $0x87] sm:$0xff] %vm937_vm9, %v870_v11 }
 0x20d   : > { %951 = vst.msk [vmem:[#allocation2 + $0x7f] sm:$0xfe] %vm935_vm8, %v868_v12  ;;  %v1057_v17 = vpack.c.bf16 %v1032_v16, %v1031_v13 }
 0x20f   : > { %2537 = vmatprep.mubr.msk.bf16.mxu0 %vm603_vm6, %v1057_v17 }
 0x210   : > { %2572 = vmatmul.mubr.msk.bf16.gmra.mrb[28].mxu1 %vm603_vm6, %v1057_v17 }
 0x213   : > { %v1034_v20 = vld [vmem:[#allocation2 + $0x88] sm:$0xff] }
 0x214   : > { %v1033_v19 = vld [vmem:[#allocation2 + $0x80] sm:$0xff] }
 0x215   : > { %v1058_v22 = vpack.c.bf16 %v1034_v20, %v1033_v19 }
 0x217   : > { %2538 = vmatmul.mubr.msk.bf16.gmra.mrb[44].mxu0 %vm603_vm6, %v1058_v22  ;;  %2575 = vmatprep.mubr.msk.bf16.mxu1 %vm603_vm6, %v1058_v22 }
 0x218   : > { %2576 = vmatmul.mubr.msk.bf16.gmra.mrb[0].mxu1 %vm603_vm6, %v3435_v60 }
 0x219   : > { %2579 = vmatprep.mubr.msk.bf16.mxu1 %vm603_vm6, %v3437_v61 }
 0x220   : > { %2580 = vmatmul.mubr.msk.bf16.gmra.mrb[4].mxu1 %vm603_vm6, %v3460_v14 }
 0x221   : > { %2583 = vmatprep.mubr.msk.bf16.mxu1 %vm603_vm6, %v3462_v15 }
 0x228   : > { %2584 = vmatmul.mubr.msk.bf16.gmra.mrb[8].mxu1 %vm603_vm6, %v3476_v21 }
 0x229   : > { %2587 = vmatprep.mubr.msk.bf16.mxu1 %vm603_vm6, %v3478_v24 }
 0x230   : > { %2588 = vmatmul.mubr.msk.bf16.gmra.mrb[12].mxu1 %vm603_vm6, %v3492_v44 }
 0x231   : > { %2593 = vmatprep.mubr.msk.bf16.mxu1 %vm603_vm6, %v3413_v41  ;;  %v1536_v41 = vld [vmem:[#allocation2 + $0x110] sm:$0xff] }
 0x238   : > { %2594 = vmatmul.mubr.msk.bf16.vlgmr.msra.gmra.mrb[16].mxu1 %vm603_vm6, %v3419_v42  ;;  %v1537_v42 = vld [vmem:[#allocation2 + $0x118] sm:$0xff] }
 0x239   : > { %2597 = vmatprep.mubr.msk.bf16.mxu1 %vm603_vm6, %v1054_v57 }
 0x240   : > { %2598 = vmatmul.mubr.msk.bf16.gmra.mrb[20].mxu1 %vm603_vm6, %v1055_v40 }
 0x241   : > { %2601 = vmatprep.mubr.msk.bf16.mxu1 %vm603_vm6, %v1056_v9 }
 0x248   : > { %2602 = vmatmul.mubr.msk.bf16.gmra.mrb[24].mxu1 %vm603_vm6, %v1057_v17 }
 0x249   : > { %2605 = vmatprep.mubr.msk.bf16.mxu1 %vm603_vm6, %v1058_v22 }
 0x250   : > { %2606 = vmatmul.mubr.msk.bf16.gmra.mrb[28].mxu1 %vm603_vm6, %v3435_v60  ;;  %v1553_v60 = vpack.c.bf16 %v1537_v42, %v1536_v41 }
 0x251   : > { %2609 = vmatprep.mubr.msk.bf16.mxu1 %vm603_vm6, %v3437_v61  ;;  %v1893_v61 = vld [vmem:[%s3837_s5] sm:$0x3] }
 0x252   : > { %2729 = vmatprep.subr.msk.bf16.mxu0 %vm1949_vm10, %v1893_v61 }
 0x258   : > { %2610 = vmatmul.mubr.msk.bf16.gmra.mrb[0].mxu1 %vm603_vm6, %v3460_v14  ;;  %v1951_v14 = vsel %vm1949_vm10, %v1893_v61, 0 }
 0x259   : > { %2613 = vmatprep.mubr.msk.bf16.mxu1 %vm603_vm6, %v3462_v15  ;;  %2626 = vmatpush3.bf16.msra.mxu0 %v1951_v14 }
 0x260   : > { %2614 = vmatmul.mubr.msk.bf16.gmra.mrb[4].mxu1 %vm603_vm6, %v3476_v21 }
 0x261   : > { %2617 = vmatprep.mubr.msk.bf16.mxu1 %vm603_vm6, %v3478_v24 }
 0x268   : > { %2618 = vmatmul.mubr.msk.bf16.gmra.mrb[8].mxu1 %vm603_vm6, %v3492_v44 }
 0x269   : > { %2621 = vmatprep.mubr.msk.bf16.mxu1 %vm603_vm6, %v3494_v46 }
 0x270   : > { %2622 = vmatmul.mubr.msk.bf16.gmra.mrb[12].mxu1 %vm603_vm6, %v1553_v60 }
 0x274   : > { %v2527_v15 = vpop.f32.mrb[32].mxu0 }
 0x275   : > { %v1161_v25 = vpop.f32.mrb[33].mxu0 }
 0x276   : > { %v2528_v26 = vpop.f32.mrb[34].mxu0 }
 0x277   : > { %v1164_v27 = vpop.f32.mrb[35].mxu0 }
 0x2ce   : > { %v2531_v50 = vpop.f32.mrb[36].mxu0 }
 0x2cf   : > { %v1177_v28 = vpop.f32.mrb[37].mxu0 }
 0x2d0   : > { %v2532_v10 = vpop.f32.mrb[38].mxu0 }
 0x2d1   : > { %v1180_v4 = vpop.f32.mrb[39].mxu0 }
 0x2de   : > { %v2535_v21 = vpop.f32.mrb[40].mxu0 }
 0x2df   : > { %v1193_v24 = vpop.f32.mrb[41].mxu0 }
 0x2e0   : > { %v2536_v29 = vpop.f32.mrb[42].mxu0 }
 0x2e1   : > { %v1196_v31 = vpop.f32.mrb[43].mxu0 }
 0x2ea   : > { %v3578_v18 = vpop.f32.mrb[44].mxu0 }
 0x2eb   : > { %v3580_v23 = vpop.f32.mrb[45].mxu0 }
 0x2ec   : > { %v3582_v32 = vpop.f32.mrb[46].mxu0 }
 0x2ed   : > { %v3584_v33 = vpop.f32.mrb[47].mxu0 }
 0x30b   : > { %v2595_v34 = vpop.f32.mrb[16].mxu1 }
 0x30c   : > { %v2661_v37 = vadd.f32 %v2595_v34, %v2527_v15  ;;  %v1647_v38 = vpop.f32.mrb[17].mxu1 }
 0x30d   : > { %v2662_v39 = vadd.f32 %v1647_v38, %v1161_v25  ;;  %v2596_v30 = vpop.f32.mrb[18].mxu1 }
 0x30e   : > { %v1815_v35 = vadd.f32 %v2661_v37, %v3589_v36  ;;  %v2663_v43 = vadd.f32 %v2596_v30, %v2528_v26  ;;  %v1650_v44 = vpop.f32.mrb[19].mxu1 }
 0x30f   : > { %v1813_v45 = vadd.f32 %v2662_v39, %v3589_v36  ;;  %v2664_v46 = vadd.f32 %v1650_v44, %v1164_v27 }
 0x310   : > { %v1816_v47 = vadd.f32 %v2663_v43, %v3589_v36  ;;  %v1847_v49 = vmax.f32 %v1815_v35, 0.0 }
 0x311   : > { %v1814_v48 = vadd.f32 %v2664_v46, %v3589_v36  ;;  %v1845_v52 = vmax.f32 %v1813_v45, 0.0 }
 0x312   : > { %v1848_v51 = vmax.f32 %v1816_v47, 0.0 }
 0x313   : > { %v1846_v53 = vmax.f32 %v1814_v48, 0.0  ;;  %v2599_v54 = vpop.f32.mrb[20].mxu1 }
 0x314   : > { %v1878_v55 = vpack.c.bf16 %v1848_v51, %v1847_v49  ;;  %v2665_v56 = vadd.f32 %v2599_v54, %v2531_v50  ;;  %v1663_v57 = vpop.f32.mrb[21].mxu1 }
 0x315   : > { %v1877_v58 = vpack.c.bf16 %v1846_v53, %v1845_v52  ;;  %v2666_v59 = vadd.f32 %v1663_v57, %v1177_v28  ;;  %v2600_v62 = vpop.f32.mrb[22].mxu1 }
 0x316   : > { %v1819_v63 = vadd.f32 %v2665_v56, %v3589_v36  ;;  %v2667_v40 = vadd.f32 %v2600_v62, %v2532_v10  ;;  %v1666_v0 = vpop.f32.mrb[23].mxu1 }
 0x317   : > { %v1817_v1 = vadd.f32 %v2666_v59, %v3589_v36  ;;  %v2668_v2 = vadd.f32 %v1666_v0, %v1180_v4  ;;  %2627 = vmatprep.mubr.msk.bf16.mxu0 %vm644_vm3, %v1877_v58 }
 0x318   : > { %v1820_v3 = vadd.f32 %v2667_v40, %v3589_v36  ;;  %2628 = vmatmul.mubr.msk.bf16.vlgmr.msra.gmra.mrb[48].mxu0 %vm644_vm3, %v1878_v55  ;;  %v1851_v6 = vmax.f32 %v1819_v63, 0.0 }
 0x319   : > { %v1818_v5 = vadd.f32 %v2668_v2, %v3589_v36  ;;  %v1849_v8 = vmax.f32 %v1817_v1, 0.0 }
 0x31a   : > { %v1852_v7 = vmax.f32 %v1820_v3, 0.0 }
 0x31b   : > { %v1850_v9 = vmax.f32 %v1818_v5, 0.0  ;;  %v2603_v11 = vpop.f32.mrb[24].mxu1 }
 0x31c   : > { %v1880_v12 = vpack.c.bf16 %v1852_v7, %v1851_v6  ;;  %v2669_v13 = vadd.f32 %v2603_v11, %v2535_v21  ;;  %v1679_v16 = vpop.f32.mrb[25].mxu1 }
 0x31d   : > { %v1879_v17 = vpack.c.bf16 %v1850_v9, %v1849_v8  ;;  %v2670_v19 = vadd.f32 %v1679_v16, %v1193_v24  ;;  %v2604_v20 = vpop.f32.mrb[26].mxu1 }
 0x31e   : > { %v1823_v22 = vadd.f32 %v2669_v13, %v3589_v36  ;;  %v2671_v41 = vadd.f32 %v2604_v20, %v2536_v29  ;;  %v1682_v42 = vpop.f32.mrb[27].mxu1 }
 0x31f   : > { %v1821_v60 = vadd.f32 %v2670_v19, %v3589_v36  ;;  %v2672_v61 = vadd.f32 %v1682_v42, %v1196_v31  ;;  %2631 = vmatprep.mubr.msk.bf16.mxu0 %vm644_vm3, %v1879_v17 }
 0x320   : > { %v1824_v14 = vadd.f32 %v2671_v41, %v3589_v36  ;;  %2632 = vmatmul.mubr.msk.bf16.gmra.mrb[52].mxu0 %vm644_vm3, %v1880_v12  ;;  %v1855_v25 = vmax.f32 %v1823_v22, 0.0 }
 0x321   : > { %v1822_v15 = vadd.f32 %v2672_v61, %v3589_v36  ;;  %v1853_v27 = vmax.f32 %v1821_v60, 0.0 }
 0x322   : > { %v1856_v26 = vmax.f32 %v1824_v14, 0.0 }
 0x323   : > { %v1854_v50 = vmax.f32 %v1822_v15, 0.0  ;;  %v2607_v28 = vpop.f32.mrb[28].mxu1 }
 0x324   : > { %v1882_v10 = vpack.c.bf16 %v1856_v26, %v1855_v25  ;;  %v2673_v4 = vadd.f32 %v2607_v28, %v3578_v18  ;;  %v1695_v21 = vpop.f32.mrb[29].mxu1 }
 0x325   : > { %v1881_v24 = vpack.c.bf16 %v1854_v50, %v1853_v27  ;;  %v2674_v29 = vadd.f32 %v1695_v21, %v3580_v23  ;;  %v2608_v31 = vpop.f32.mrb[30].mxu1 }
 0x326   : > { %v1827_v34 = vadd.f32 %v2673_v4, %v3589_v36  ;;  %v2675_v37 = vadd.f32 %v2608_v31, %v3582_v32  ;;  %v1698_v38 = vpop.f32.mrb[31].mxu1 }
 0x327   : > { %v1825_v39 = vadd.f32 %v2674_v29, %v3589_v36  ;;  %v2676_v30 = vadd.f32 %v1698_v38, %v3584_v33  ;;  %2635 = vmatprep.mubr.msk.bf16.mxu0 %vm644_vm3, %v1881_v24 }
 0x328   : > { %v1828_v35 = vadd.f32 %v2675_v37, %v3589_v36  ;;  %2636 = vmatmul.mubr.msk.bf16.gmra.mrb[56].mxu0 %vm644_vm3, %v1882_v10  ;;  %v1859_v43 = vmax.f32 %v1827_v34, 0.0 }
 0x329   : > { %v1826_v18 = vadd.f32 %v2676_v30, %v3589_v36  ;;  %v1857_v44 = vmax.f32 %v1825_v39, 0.0 }
 0x32a   : > { %v1860_v23 = vmax.f32 %v1828_v35, 0.0 }
 0x32b   : > { %v1858_v45 = vmax.f32 %v1826_v18, 0.0  ;;  %v2611_v46 = vpop.f32.mrb[0].mxu1  ;;  %v3646_v18 = vld [vmem:[%s3838_s6] ss:$0 sm:$0xff] }
 0x32c   : > { %v1884_v47 = vpack.c.bf16 %v1860_v23, %v1859_v43  ;;  %v1831_v32 = vadd.f32 %v2611_v46, %v3589_v36  ;;  %v1711_v48 = vpop.f32.mrb[1].mxu1  ;;  %v2786_v46 = vld [vmem:[%s3074_s15 + $0x10] sm:$0xff] }
 0x32d   : > { %v1883_v49 = vpack.c.bf16 %v1858_v45, %v1857_v44  ;;  %v1829_v33 = vadd.f32 %v3589_v36, %v1711_v48  ;;  %v2612_v51 = vpop.f32.mrb[2].mxu1 }
 0x32e   : > { %v1832_v52 = vadd.f32 %v2612_v51, %v3589_v36  ;;  %v1714_v53 = vpop.f32.mrb[3].mxu1  ;;  %v1863_v55 = vmax.f32 %v1831_v32, 0.0 }
 0x32f   : > { %v1830_v54 = vadd.f32 %v3589_v36, %v1714_v53  ;;  %2639 = vmatprep.mubr.msk.bf16.mxu0 %vm644_vm3, %v1883_v49  ;;  %v1861_v57 = vmax.f32 %v1829_v33, 0.0  ;;  %v2787_v49 = vld [vmem:[%s3074_s15] sm:$0xff]  ;;  %v2788_v53 = vld [vmem:[%s3074_s15 + $0x18] sm:$0xff] }
 0x330   : > { %v1864_v56 = vmax.f32 %v1832_v52, 0.0  ;;  %2640 = vmatmul.mubr.msk.bf16.gmra.mrb[60].mxu0 %vm644_vm3, %v1884_v47 }
 0x331   : > { %v1862_v58 = vmax.f32 %v1830_v54, 0.0 }
 0x332   : > { %v1886_v59 = vpack.c.bf16 %v1864_v56, %v1863_v55  ;;  %v2789_v56 = vld [vmem:[%s3074_s15 + $0x8] sm:$0xff] }
 0x333   : > { %v1885_v62 = vpack.c.bf16 %v1862_v58, %v1861_v57  ;;  %v2615_v63 = vpop.f32.mrb[4].mxu1 }
 0x334   : > { %v1835_v40 = vadd.f32 %v2615_v63, %v3589_v36  ;;  %v1727_v0 = vpop.f32.mrb[5].mxu1 }
 0x335   : > { %v1833_v1 = vadd.f32 %v3589_v36, %v1727_v0  ;;  %v2616_v2 = vpop.f32.mrb[6].mxu1  ;;  %2643 = vmatprep.mubr.msk.bf16.mxu0 %vm644_vm3, %v1885_v62 }
 0x336   : > { %v1836_v3 = vadd.f32 %v2616_v2, %v3589_v36  ;;  %v1730_v5 = vpop.f32.mrb[7].mxu1  ;;  %v1867_v7 = vmax.f32 %v1835_v40, 0.0  ;;  %v2790_v2 = vld [vmem:[%s3074_s15 + $0x30] sm:$0xff] }
 0x337   : > { %v1834_v6 = vadd.f32 %v3589_v36, %v1730_v5  ;;  %v1865_v9 = vmax.f32 %v1833_v1, 0.0 }
 0x338   : > { %v1868_v8 = vmax.f32 %v1836_v3, 0.0  ;;  %2644 = vmatmul.mubr.msk.bf16.gmra.mrb[64].mxu0 %vm644_vm3, %v1886_v59 }
 0x339   : > { %v1866_v11 = vmax.f32 %v1834_v6, 0.0 }
 0x33a   : > { %v1888_v12 = vpack.c.bf16 %v1868_v8, %v1867_v7  ;;  %v2791_v7 = vld [vmem:[%s3074_s15 + $0x20] sm:$0xff] }
 0x33b   : > { %v1887_v13 = vpack.c.bf16 %v1866_v11, %v1865_v9  ;;  %v2619_v16 = vpop.f32.mrb[8].mxu1 }
 0x33c   : > { %v1839_v17 = vadd.f32 %v2619_v16, %v3589_v36  ;;  %v1743_v19 = vpop.f32.mrb[9].mxu1 }
 0x33d   : > { %v1837_v20 = vadd.f32 %v3589_v36, %v1743_v19  ;;  %v2620_v22 = vpop.f32.mrb[10].mxu1  ;;  %2647 = vmatprep.mubr.msk.bf16.mxu0 %vm644_vm3, %v1887_v13 }
 0x33e   : > { %v1840_v41 = vadd.f32 %v2620_v22, %v3589_v36  ;;  %v1746_v42 = vpop.f32.mrb[11].mxu1  ;;  %v1871_v61 = vmax.f32 %v1839_v17, 0.0  ;;  %v2793_v17 = vld [vmem:[%s3074_s15 + $0x28] sm:$0xff] }
 0x33f   : > { %v1838_v60 = vadd.f32 %v3589_v36, %v1746_v42  ;;  %v1869_v15 = vmax.f32 %v1837_v20, 0.0 }
 0x340   : > { %v1872_v14 = vmax.f32 %v1840_v41, 0.0  ;;  %2648 = vmatmul.mubr.msk.bf16.gmra.mrb[68].mxu0 %vm644_vm3, %v1888_v12  ;;  %v2792_v12 = vld [vmem:[%s3074_s15 + $0x38] sm:$0xff] }
 0x341   : > { %v1870_v25 = vmax.f32 %v1838_v60, 0.0 }
 0x342   : > { %v1890_v26 = vpack.c.bf16 %v1872_v14, %v1871_v61 }
 0x343   : > { %v1889_v27 = vpack.c.bf16 %v1870_v25, %v1869_v15  ;;  %v2623_v50 = vpop.f32.mrb[12].mxu1  ;;  %v2794_v15 = vld [vmem:[%s3074_s15 + $0x50] sm:$0xff] }
 0x344   : > { %v1843_v28 = vadd.f32 %v2623_v50, %v3589_v36  ;;  %v1759_v10 = vpop.f32.mrb[13].mxu1  ;;  %v2795_v50 = vld [vmem:[%s3074_s15 + $0x40] sm:$0xff] }
 0x345   : > { %v1841_v4 = vadd.f32 %v3589_v36, %v1759_v10  ;;  %v2624_v21 = vpop.f32.mrb[14].mxu1  ;;  %2651 = vmatprep.mubr.msk.bf16.mxu0 %vm644_vm3, %v1889_v27 }
 0x346   : > { %v1844_v24 = vadd.f32 %v2624_v21, %v3589_v36  ;;  %v1762_v29 = vpop.f32.mrb[15].mxu1  ;;  %v1875_v34 = vmax.f32 %v1843_v28, 0.0  ;;  %v2796_v21 = vld [vmem:[%s3074_s15 + $0x58] sm:$0xff] }
 0x347   : > { %v1842_v31 = vadd.f32 %v3589_v36, %v1762_v29  ;;  %v1873_v38 = vmax.f32 %v1841_v4, 0.0 }
 0x348   : > { %v1876_v37 = vmax.f32 %v1844_v24, 0.0  ;;  %2652 = vmatmul.mubr.msk.bf16.gmra.mrb[72].mxu0 %vm644_vm3, %v1890_v26 }
 0x349   : > { %v1874_v39 = vmax.f32 %v1842_v31, 0.0  ;;  %v2797_v31 = vld [vmem:[%s3074_s15 + $0x48] sm:$0xff] }
 0x34a   : > { %v1892_v30 = vpack.c.bf16 %v1876_v37, %v1875_v34 }
 0x34b   : > { %v1891_v35 = vpack.c.bf16 %v1874_v39, %v1873_v38 }
 0x34d   : > { %2655 = vmatprep.mubr.msk.bf16.mxu0 %vm644_vm3, %v1891_v35 }
 0x350   : > { %2656 = vmatmul.mubr.msk.bf16.gmra.mrb[76].mxu0 %vm644_vm3, %v1892_v30 }
 0x3eb   : > { %v2629_v36 = vpop.f32.mrb[48].mxu0 }
 0x3ec   : > { %v1996_v43 = vadd.f32 %v2629_v36, %v3646_v18  ;;  %v1987_v23 = vpop.f32.mrb[49].mxu0 }
 0x3ed   : > { %v1988_v44 = vadd.f32 %v3646_v18, %v1987_v23  ;;  %v2630_v45 = vpop.f32.mrb[50].mxu0  ;;  %v2798_v23 = vld [vmem:[%s3074_s15 + $0x70] sm:$0xff] }
 0x3ee   : > { %v2116_v47 = vadd.f32 %v2786_v46, %v1996_v43  ;;  %v1999_v32 = vadd.f32 %v2630_v45, %v3646_v18  ;;  %v1990_v48 = vpop.f32.mrb[51].mxu0 }
 0x3ef   : > { %v2114_v33 = vadd.f32 %v2787_v49, %v1988_v44  ;;  %v1991_v51 = vadd.f32 %v3646_v18, %v1990_v48 }
 0x3f0   : > { %v2148_v52 = vmax.f32 %v2116_v47, 0.0  ;;  %v2117_v54 = vadd.f32 %v2788_v53, %v1999_v32  ;;  %v2799_v47 = vld [vmem:[%s3074_s15 + $0x60] sm:$0xff]  ;;  %v2801_v53 = vld [vmem:[%s3074_s15 + $0x68] sm:$0xff] }
 0x3f1   : > { %v2146_v55 = vmax.f32 %v2114_v33, 0.0  ;;  %v2115_v57 = vadd.f32 %v2789_v56, %v1991_v51  ;;  %v2800_v33 = vld [vmem:[%s3074_s15 + $0x78] sm:$0xff] }
 0x3f2   : > { %2180 = vst.msk [vmem:[%s3658_s8 + $0x10] sm:$0xff] %vm361_vm0, %v2148_v52  ;;  %v2149_v58 = vmax.f32 %v2117_v54, 0.0 }
 0x3f3   : > { %2178 = vst.msk [vmem:[%s3658_s8] sm:$0xff] %vm361_vm0, %v2146_v55  ;;  %v2147_v59 = vmax.f32 %v2115_v57, 0.0  ;;  %v2633_v62 = vpop.f32.mrb[52].mxu0 }
 0x3f4   : > { %2181 = vst.msk [vmem:[%s3658_s8 + $0x18] sm:$0xff] %vm361_vm0, %v2149_v58  ;;  %v2012_v63 = vadd.f32 %v2633_v62, %v3646_v18  ;;  %v2003_v40 = vpop.f32.mrb[53].mxu0 }
 0x3f5   : > { %2179 = vst.msk [vmem:[%s3658_s8 + $0x8] sm:$0xff] %vm361_vm0, %v2147_v59  ;;  %v2004_v0 = vadd.f32 %v3646_v18, %v2003_v40  ;;  %v2634_v1 = vpop.f32.mrb[54].mxu0  ;;  %v2802_v40 = vld [vmem:[%s3074_s15 + $0x90] sm:$0xff] }
 0x3f6   : > { %v2120_v3 = vadd.f32 %v2790_v2, %v2012_v63  ;;  %v2015_v5 = vadd.f32 %v2634_v1, %v3646_v18  ;;  %v2006_v6 = vpop.f32.mrb[55].mxu0 }
 0x3f7   : > { %v2118_v8 = vadd.f32 %v2791_v7, %v2004_v0  ;;  %v2007_v9 = vadd.f32 %v3646_v18, %v2006_v6 }
 0x3f8   : > { %v2152_v11 = vmax.f32 %v2120_v3, 0.0  ;;  %v2121_v13 = vadd.f32 %v2792_v12, %v2015_v5  ;;  %v2803_v3 = vld [vmem:[%s3074_s15 + $0x80] sm:$0xff]  ;;  %v2805_v12 = vld [vmem:[%s3074_s15 + $0x88] sm:$0xff] }
 0x3f9   : > { %v2150_v16 = vmax.f32 %v2118_v8, 0.0  ;;  %v2119_v19 = vadd.f32 %v2793_v17, %v2007_v9  ;;  %v2804_v8 = vld [vmem:[%s3074_s15 + $0x98] sm:$0xff] }
 0x3fa   : > { %2184 = vst.msk [vmem:[%s3658_s8 + $0x30] sm:$0xff] %vm361_vm0, %v2152_v11  ;;  %v2153_v20 = vmax.f32 %v2121_v13, 0.0 }
 0x3fb   : > { %2182 = vst.msk [vmem:[%s3658_s8 + $0x20] sm:$0xff] %vm361_vm0, %v2150_v16  ;;  %v2151_v22 = vmax.f32 %v2119_v19, 0.0  ;;  %v2637_v41 = vpop.f32.mrb[56].mxu0 }
 0x3fc   : > { %2185 = vst.msk [vmem:[%s3658_s8 + $0x38] sm:$0xff] %vm361_vm0, %v2153_v20  ;;  %v2028_v42 = vadd.f32 %v2637_v41, %v3646_v18  ;;  %v2019_v60 = vpop.f32.mrb[57].mxu0 }
 0x3fd   : > { %2183 = vst.msk [vmem:[%s3658_s8 + $0x28] sm:$0xff] %vm361_vm0, %v2151_v22  ;;  %v2020_v61 = vadd.f32 %v3646_v18, %v2019_v60  ;;  %v2638_v14 = vpop.f32.mrb[58].mxu0  ;;  %v2806_v60 = vld [vmem:[%s3074_s15 + $0xb0] sm:$0xff] }
 0x3fe   : > { %v2124_v25 = vadd.f32 %v2794_v15, %v2028_v42  ;;  %v2031_v26 = vadd.f32 %v2638_v14, %v3646_v18  ;;  %v2022_v27 = vpop.f32.mrb[59].mxu0 }
 0x3ff   : > { %v2122_v28 = vadd.f32 %v2795_v50, %v2020_v61  ;;  %v2023_v10 = vadd.f32 %v3646_v18, %v2022_v27 }
 0x400   : > { %v2156_v4 = vmax.f32 %v2124_v25, 0.0  ;;  %v2125_v24 = vadd.f32 %v2796_v21, %v2031_v26  ;;  %v2807_v25 = vld [vmem:[%s3074_s15 + $0xa0] sm:$0xff]  ;;  %v2809_v21 = vld [vmem:[%s3074_s15 + $0xa8] sm:$0xff] }
 0x401   : > { %v2154_v29 = vmax.f32 %v2122_v28, 0.0  ;;  %v2123_v34 = vadd.f32 %v2797_v31, %v2023_v10  ;;  %v2808_v28 = vld [vmem:[%s3074_s15 + $0xb8] sm:$0xff] }
 0x402   : > { %2188 = vst.msk [vmem:[%s3658_s8 + $0x50] sm:$0xff] %vm361_vm0, %v2156_v4  ;;  %v2157_v37 = vmax.f32 %v2125_v24, 0.0 }
 0x403   : > { %2186 = vst.msk [vmem:[%s3658_s8 + $0x40] sm:$0xff] %vm361_vm0, %v2154_v29  ;;  %v2155_v38 = vmax.f32 %v2123_v34, 0.0  ;;  %v2641_v39 = vpop.f32.mrb[60].mxu0 }
 0x404   : > { %2189 = vst.msk [vmem:[%s3658_s8 + $0x58] sm:$0xff] %vm361_vm0, %v2157_v37  ;;  %v2044_v30 = vadd.f32 %v2641_v39, %v3646_v18  ;;  %v2035_v35 = vpop.f32.mrb[61].mxu0 }
 0x405   : > { %2187 = vst.msk [vmem:[%s3658_s8 + $0x48] sm:$0xff] %vm361_vm0, %v2155_v38  ;;  %v2036_v36 = vadd.f32 %v3646_v18, %v2035_v35  ;;  %v2642_v43 = vpop.f32.mrb[62].mxu0  ;;  %v2810_v35 = vld [vmem:[%s3074_s15 + $0xd0] sm:$0xff] }
 0x406   : > { %v2128_v44 = vadd.f32 %v2798_v23, %v2044_v30  ;;  %v2047_v45 = vadd.f32 %v2642_v43, %v3646_v18  ;;  %v2038_v46 = vpop.f32.mrb[63].mxu0 }
 0x407   : > { %v2126_v32 = vadd.f32 %v2799_v47, %v2036_v36  ;;  %v2039_v48 = vadd.f32 %v3646_v18, %v2038_v46 }
 0x408   : > { %v2160_v49 = vmax.f32 %v2128_v44, 0.0  ;;  %v2129_v51 = vadd.f32 %v2800_v33, %v2047_v45  ;;  %v2811_v44 = vld [vmem:[%s3074_s15 + $0xc0] sm:$0xff]  ;;  %v2813_v33 = vld [vmem:[%s3074_s15 + $0xc8] sm:$0xff] }
 0x409   : > { %v2158_v52 = vmax.f32 %v2126_v32, 0.0  ;;  %v2127_v54 = vadd.f32 %v2801_v53, %v2039_v48  ;;  %v2812_v32 = vld [vmem:[%s3074_s15 + $0xd8] sm:$0xff] }
 0x40a   : > { %2192 = vst.msk [vmem:[%s3658_s8 + $0x70] sm:$0xff] %vm361_vm0, %v2160_v49  ;;  %v2161_v55 = vmax.f32 %v2129_v51, 0.0 }
 0x40b   : > { %2190 = vst.msk [vmem:[%s3658_s8 + $0x60] sm:$0xff] %vm361_vm0, %v2158_v52  ;;  %v2159_v56 = vmax.f32 %v2127_v54, 0.0  ;;  %v2645_v57 = vpop.f32.mrb[64].mxu0 }
 0x40c   : > { %2193 = vst.msk [vmem:[%s3658_s8 + $0x78] sm:$0xff] %vm361_vm0, %v2161_v55  ;;  %v2060_v58 = vadd.f32 %v2645_v57, %v3646_v18  ;;  %v2051_v59 = vpop.f32.mrb[65].mxu0 }
 0x40d   : > { %2191 = vst.msk [vmem:[%s3658_s8 + $0x68] sm:$0xff] %vm361_vm0, %v2159_v56  ;;  %v2052_v62 = vadd.f32 %v3646_v18, %v2051_v59  ;;  %v2646_v63 = vpop.f32.mrb[66].mxu0  ;;  %v2814_v59 = vld [vmem:[%s3074_s15 + $0xf0] sm:$0xff] }
 0x40e   : > { %v2132_v0 = vadd.f32 %v2802_v40, %v2060_v58  ;;  %v2063_v1 = vadd.f32 %v2646_v63, %v3646_v18  ;;  %v2054_v2 = vpop.f32.mrb[67].mxu0 }
 0x40f   : > { %v2130_v5 = vadd.f32 %v2803_v3, %v2052_v62  ;;  %v2055_v6 = vadd.f32 %v3646_v18, %v2054_v2 }
 0x410   : > { %v2164_v7 = vmax.f32 %v2132_v0, 0.0  ;;  %v2133_v9 = vadd.f32 %v2804_v8, %v2063_v1  ;;  %v2815_v0 = vld [vmem:[%s3074_s15 + $0xe0] sm:$0xff]  ;;  %v2817_v8 = vld [vmem:[%s3074_s15 + $0xe8] sm:$0xff] }
 0x411   : > { %v2162_v11 = vmax.f32 %v2130_v5, 0.0  ;;  %v2131_v13 = vadd.f32 %v2805_v12, %v2055_v6  ;;  %v2816_v5 = vld [vmem:[%s3074_s15 + $0xf8] sm:$0xff]  ;;  %s2848_s15 = scalar_lea.vmem %s3783_s11, 4096 }
 0x412   : > { %2196 = vst.msk [vmem:[%s3658_s8 + $0x90] sm:$0xff] %vm361_vm0, %v2164_v7  ;;  %v2165_v16 = vmax.f32 %v2133_v9, 0.0  ;;  %p2849_p6 = scmp.ne.s32.totalorder %s3783_s11, %s2848_s15  ;;  %p2856_p10 = scmp.lt.s32.totalorder %s2854_s29, %s2848_s15 }
 0x413   : > { %2194 = vst.msk [vmem:[%s3658_s8 + $0x80] sm:$0xff] %vm361_vm0, %v2162_v11  ;;  %v2163_v17 = vmax.f32 %v2131_v13, 0.0  ;;  %v2649_v19 = vpop.f32.mrb[68].mxu0 }
 0x414   : > { %2197 = vst.msk [vmem:[%s3658_s8 + $0x98] sm:$0xff] %vm361_vm0, %v2165_v16  ;;  %v2076_v20 = vadd.f32 %v2649_v19, %v3646_v18  ;;  %v2067_v22 = vpop.f32.mrb[69].mxu0  ;;  %p2850_p12 = pnand %p2849_p6, %p3846_p11  ;;  %p2857_p0 = por %p2856_p10, %p2855_p8 }
 0x415   : > { %2195 = vst.msk [vmem:[%s3658_s8 + $0x88] sm:$0xff] %vm361_vm0, %v2163_v17  ;;  %v2068_v41 = vadd.f32 %v3646_v18, %v2067_v22  ;;  %v2650_v42 = vpop.f32.mrb[70].mxu0 }
 0x416   : > { %v2136_v61 = vadd.f32 %v2806_v60, %v2076_v20  ;;  %v2079_v14 = vadd.f32 %v2650_v42, %v3646_v18  ;;  %v2070_v15 = vpop.f32.mrb[71].mxu0  ;;  %p2851_p13 = pneg %p2850_p12 }
 0x417   : > { %v2134_v26 = vadd.f32 %v2807_v25, %v2068_v41  ;;  %v2071_v27 = vadd.f32 %v3646_v18, %v2070_v15 }
 0x418   : > { %v2168_v50 = vmax.f32 %v2136_v61, 0.0  ;;  %v2137_v10 = vadd.f32 %v2808_v28, %v2079_v14  ;;  %p2858_p2 = pnand %p2857_p0, %p2851_p13 }
 0x419   : > { %v2166_v4 = vmax.f32 %v2134_v26, 0.0  ;;  %v2135_v24 = vadd.f32 %v2809_v21, %v2071_v27 }
 0x41a   : > { %2200 = vst.msk [vmem:[%s3658_s8 + $0xb0] sm:$0xff] %vm361_vm0, %v2168_v50  ;;  %v2169_v29 = vmax.f32 %v2137_v10, 0.0 }
 0x41b   : > { %2198 = vst.msk [vmem:[%s3658_s8 + $0xa0] sm:$0xff] %vm361_vm0, %v2166_v4  ;;  %v2167_v31 = vmax.f32 %v2135_v24, 0.0  ;;  %v2653_v34 = vpop.f32.mrb[72].mxu0 }
 0x41c   : > { %2201 = vst.msk [vmem:[%s3658_s8 + $0xb8] sm:$0xff] %vm361_vm0, %v2169_v29  ;;  %v2092_v37 = vadd.f32 %v2653_v34, %v3646_v18  ;;  %v2083_v38 = vpop.f32.mrb[73].mxu0 }
 0x41d   : > { %2199 = vst.msk [vmem:[%s3658_s8 + $0xa8] sm:$0xff] %vm361_vm0, %v2167_v31  ;;  %v2084_v39 = vadd.f32 %v3646_v18, %v2083_v38  ;;  %v2654_v30 = vpop.f32.mrb[74].mxu0 }
 0x41e   : > { %v2140_v36 = vadd.f32 %v2810_v35, %v2092_v37  ;;  %v2095_v43 = vadd.f32 %v2654_v30, %v3646_v18  ;;  %v2086_v23 = vpop.f32.mrb[75].mxu0 }
 0x41f   : > { %v2138_v45 = vadd.f32 %v2811_v44, %v2084_v39  ;;  %v2087_v46 = vadd.f32 %v3646_v18, %v2086_v23 }
 0x420   : > { %v2172_v47 = vmax.f32 %v2140_v36, 0.0  ;;  %v2141_v48 = vadd.f32 %v2812_v32, %v2095_v43 }
 0x421   : > { %v2170_v49 = vmax.f32 %v2138_v45, 0.0  ;;  %v2139_v51 = vadd.f32 %v2813_v33, %v2087_v46 }
 0x422   : > { %2204 = vst.msk [vmem:[%s3658_s8 + $0xd0] sm:$0xff] %vm361_vm0, %v2172_v47  ;;  %v2173_v52 = vmax.f32 %v2141_v48, 0.0 }
 0x423   : > { %2202 = vst.msk [vmem:[%s3658_s8 + $0xc0] sm:$0xff] %vm361_vm0, %v2170_v49  ;;  %v2171_v53 = vmax.f32 %v2139_v51, 0.0  ;;  %v2657_v54 = vpop.f32.mrb[76].mxu0 }
 0x424   : > { %2205 = vst.msk [vmem:[%s3658_s8 + $0xd8] sm:$0xff] %vm361_vm0, %v2173_v52  ;;  %v2108_v55 = vadd.f32 %v2657_v54, %v3646_v18  ;;  %v2099_v56 = vpop.f32.mrb[77].mxu0 }
 0x425   : > { %2203 = vst.msk [vmem:[%s3658_s8 + $0xc8] sm:$0xff] %vm361_vm0, %v2171_v53  ;;  %v2100_v57 = vadd.f32 %v3646_v18, %v2099_v56  ;;  %v2658_v58 = vpop.f32.mrb[78].mxu0 }
 0x426   : > { %v2144_v62 = vadd.f32 %v2814_v59, %v2108_v55  ;;  %v2111_v63 = vadd.f32 %v2658_v58, %v3646_v18  ;;  %v2102_v40 = vpop.f32.mrb[79].mxu0 }
 0x427   : > { %v2142_v1 = vadd.f32 %v2815_v0, %v2100_v57  ;;  %v2103_v2 = vadd.f32 %v3646_v18, %v2102_v40 }
 0x428   : > { %v2176_v3 = vmax.f32 %v2144_v62, 0.0  ;;  %v2145_v6 = vadd.f32 %v2816_v5, %v2111_v63 }
 0x429   : > { %v2174_v7 = vmax.f32 %v2142_v1, 0.0  ;;  %v2143_v9 = vadd.f32 %v2817_v8, %v2103_v2 }
 0x42a   : > { %2208 = vst.msk [vmem:[%s3658_s8 + $0xf0] sm:$0xff] %vm361_vm0, %v2176_v3  ;;  %v2177_v11 = vmax.f32 %v2145_v6, 0.0 }
 0x42b   : > { %2206 = vst.msk [vmem:[%s3658_s8 + $0xe0] sm:$0xff] %vm361_vm0, %v2174_v7  ;;  %v2175_v18 = vmax.f32 %v2143_v9, 0.0 }
 0x42c   : > { %2209 = vst.msk [vmem:[%s3658_s8 + $0xf8] sm:$0xff] %vm361_vm0, %v2177_v11 }
 0x42d   : > { %2207 = vst.msk [vmem:[%s3658_s8 + $0xe8] sm:$0xff] %vm361_vm0, %v2175_v18 }
 0x42e   : > { %2861 = shalt.err (!%p2858_p2)
}
 0x42f   : > { %s2862_s21 = scalar_lea.hbm %s3779_s22, 4096  ;;  %s2866_s17 = scalar_lea.hbm %s3839_s7, 8192 }
 0x430   : > { %p2863_p4 = scmp.ne.s32.totalorder %s3779_s22, %s2862_s21  ;;  %p2867_p9 = scmp.lt.u32.totalorder %s3779_s22, %s3839_s7 }
 0x431   : > { %p2868_p1 = scmp.lt.u32.totalorder %s2866_s17, %s2862_s21  ;;  %p2870_p6 = scmp.lt.u32.totalorder %s2862_s21, %s3779_s22 }
 0x432   : > { %p2864_p5 = pnand %p2863_p4, %p3846_p11 }
 0x433   : > { %p2869_p3 = por %p2868_p1, %p2867_p9 }
 0x434   : > { %p2865_p7 = pneg %p2864_p5 }
 0x435   : > { %p2871_p12 = por %p2870_p6, %p2869_p3 }
 0x437   : > { %p2872_p13 = pnand %p2871_p12, %p2865_p7 }
 0x439   : > { %2875 = shalt.err (!%p2872_p13)
}
 0x43a   : > { %s2923_s15 = smov 128  }
 0x43b   : > { %2732 = dma.vmem_to_hbm [thread:$0]  (%p3846_p11), %s3783_s11, 4096, %s3779_s22, %s2211_s28, %s2923_s15, %s2923_s15, %s2921_s19  }
 0x43c PF: > { %s2239_s12 = sand.u32 1, %s2902_s24   ;;  %p3847_p8 = scmp.ne.s32.totalorder %s3844_s14, 0 }
 0x43d   : > { %p3848_p10 = scmp.ge.s32.totalorder %s2914_s27, 2  ;;  %s2240_s23 = scalar_lea.sflag [#allocation5], %s2239_s12 }
 0x43f   : > { %p2739_p0 = pnand %p3848_p10, %p3847_p8 }
 0x441   : > { %2897 = dma.done.wait (!%p2739_p0), %s2240_s23, 4096  }
 0x442   : > { %2899 = vsyncadd (!%p2739_p0), %s2240_s23, 4294963200  ;;  %p20_p2 = scmp.ge.s32.totalorder %s2989_s30, 4   ;;  %s3849_s24 = smov %s2906_s25 }
 0x443   : > { %s3850_s25 = smov %s2910_s26  ;;  %s3851_s26 = smov %s3001_s10 }
 0x444   : > { %s3852_s27 = smov %s2989_s30  ;;  %22 = sbr.rel (!%p20_p2) target bundleno = 5 (0x5), region = 98 }
 0x44b   :  { %2245 = vsyncpa [#allocation4], 1 }
 0x44c   :  { %2247 = vsyncpa [#allocation4 + $0x1], 1 }
 0x44d   :  { %2248 = vsyncpa [#allocation5], 1 }
 0x44e   :  { %2250 = vsyncpa [#allocation5 + $0x1], 1 }

</bundles_post_ra>
